<compile_context>
chip_gen: v7x
topology: tpu7x:2x2x1
jax: 0.10.0
libtpu: 0.0.40
codegen_flags: <defaults>
</compile_context>

<pallas_src>
import functools

import jax
import jax.numpy as jnp
import numpy as np
from jax.experimental import pallas as pl
from jax.experimental.pallas import tpu as pltpu

K_SIZE = 7  # kernel size of the dilated conv inside ResidualUnit


def _round_up(x, m):
    return ((x + m - 1) // m) * m


def _wide_mxu():
    """True on chips with a 256-wide MXU (v6e / v7x): im2col helps at C==128."""
    try:
        kind = jax.devices()[0].device_kind.lower()
    except Exception:
        return True
    for tag in ("v2", "v3", "v4", "v5"):
        if tag in kind:
            return False
    return True


def _vmem_limit_bytes(TT, Cp, K, WIN, mxu_bytes, use_im2col):
    f32 = 4
    body_io = 2 * (TT * Cp * f32) * 2                      # body-in + out, double buffered
    weights = 2 * ((K + 1) * Cp * Cp * mxu_bytes + 4 * Cp * f32)
    window = WIN * Cp * f32                                # manual-DMA window scratch
    temps = 4 * TT * Cp * f32                              # h / out / cast temporaries
    if use_im2col:
        temps += 2 * TT * K * Cp * mxu_bytes
    total = body_io + weights + window + temps
    return int(min(max(2 * total, 24 * 1024 * 1024), 96 * 1024 * 1024))


# ----------------------------------------------------------------------------
# Fused Pallas kernel
# ----------------------------------------------------------------------------
def _residual_unit_kernel(x_any,       # (B, T_halo, Cp) raw HBM (halo source, pl.ANY)
                          xb_ref,      # (TT, Cp)  body tile == residual tile (pipelined)
                          a1_ref,      # (1, Cp)   snake #1 alpha
                          w1_ref,      # (K*Cp, Cp) k=7 conv weight (tap-major)
                          b1_ref,      # (1, Cp)
                          a2_ref,      # (1, Cp)   snake #2 alpha
                          w2_ref,      # (Cp, Cp)  k=1 conv weight
                          b2_ref,      # (1, Cp)
                          o_ref,       # (TT, Cp)  output tile
                          win_ref,     # VMEM scratch (HALO8 + TT + HALO8, Cp)
                          sems,        # DMA semaphores (2,)
                          *, K, dilation, pad, TT, HALO8, use_im2col, mxu_dtype):
    b = pl.program_id(0)
    t = pl.program_id(1)
    Cp = o_ref.shape[-1]

    # ---- kick off the two small halo DMAs (sublane-aligned HALO8-row windows)
    # x_any row (TT + tau) holds x[tau]; body tile covers tau in [t*TT, t*TT+TT).
    l_start = pl.multiple_of((t + 1) * TT - HALO8, 8)   # tau in [t*TT-HALO8, t*TT)
    r_start = pl.multiple_of((t + 2) * TT, 8)           # tau in [t*TT+TT, +HALO8)
    cp_l = pltpu.make_async_copy(x_any.at[b, pl.ds(l_start, HALO8), :],
                                 win_ref.at[pl.ds(0, HALO8), :], sems.at[0])
    cp_r = pltpu.make_async_copy(x_any.at[b, pl.ds(r_start, HALO8), :],
                                 win_ref.at[pl.ds(HALO8 + TT, HALO8), :], sems.at[1])
    cp_l.start()
    cp_r.start()

    # ---- Snake1d #1 on the body while the halo DMAs are in flight -----------
    # x + sin(a x)^2 / a  ==  x + (0.5/a) - (0.5/a) * cos(2 a x)
    a1 = a1_ref[...]
    ha1 = 0.5 / (a1 + 1e-9)          # hoisted reciprocal, (1, Cp)
    ta1 = 2.0 * a1
    xb = xb_ref[...]
    win_ref[pl.ds(HALO8, TT), :] = xb + ha1 - ha1 * jnp.cos(ta1 * xb)

    # ---- finish halos; snake them in place (aligned sub-blocks) -------------
    cp_l.wait()
    cp_r.wait()
    hl = win_ref[pl.ds(0, HALO8), :]
    win_ref[pl.ds(0, HALO8), :] = hl + ha1 - ha1 * jnp.cos(ta1 * hl)
    hr = win_ref[pl.ds(HALO8 + TT, HALO8), :]
    win_ref[pl.ds(HALO8 + TT, HALO8), :] = hr + ha1 - ha1 * jnp.cos(ta1 * hr)

    # ---- WNConv1d k=7, dilation d, 'same' padding (bf16 MXU, f32 accumulate)
    yw = win_ref[...]                 # (HALO8 + TT + HALO8, Cp), snaked window
    base = HALO8 - pad                # output row i uses rows base + k*d + i
    if use_im2col:
        cols = jnp.concatenate(
            [yw[base + k * dilation: base + k * dilation + TT, :] for k in range(K)],
            axis=-1).astype(mxu_dtype)
        h = jnp.dot(cols, w1_ref[...], preferred_element_type=jnp.float32)
    else:
        h = jnp.zeros((TT, Cp), jnp.float32)
        for k in range(K):
            h = h + jnp.dot(
                yw[base + k * dilation: base + k * dilation + TT, :].astype(mxu_dtype),
                w1_ref[pl.ds(k * Cp, Cp), :],
                preferred_element_type=jnp.float32)
    h = h + b1_ref[...]

    # ---- Snake1d #2 ----------------------------------------------------------
    a2 = a2_ref[...]
    ha2 = 0.5 / (a2 + 1e-9)
    ta2 = 2.0 * a2
    h = h + ha2 - ha2 * jnp.cos(ta2 * h)

    # ---- WNConv1d k=1 + residual add -----------------------------------------
    y = jnp.dot(h.astype(mxu_dtype), w2_ref[...], preferred_element_type=jnp.float32)
    o_ref[...] = (y + b2_ref[...] + xb).astype(o_ref.dtype)


# ----------------------------------------------------------------------------
# Wrappers
# ----------------------------------------------------------------------------
def _prepare_params(params, C, Cp, K, mxu_dtype):
    dc = Cp - C
    a1 = jnp.pad(params["alpha1"].astype(jnp.float32), ((0, 0), (0, dc)),
                 constant_values=1.0)
    a2 = jnp.pad(params["alpha2"].astype(jnp.float32), ((0, 0), (0, dc)),
                 constant_values=1.0)
    b1 = jnp.pad(params["b1"].astype(jnp.float32), ((0, 0), (0, dc)))
    b2 = jnp.pad(params["b2"].astype(jnp.float32), ((0, 0), (0, dc)))
    w1 = jnp.pad(params["w1"].astype(jnp.float32),
                 ((0, 0), (0, dc), (0, dc))).reshape(K * Cp, Cp).astype(mxu_dtype)
    w2 = jnp.pad(params["w2"].astype(jnp.float32),
                 ((0, dc), (0, dc))).astype(mxu_dtype)
    return a1, w1, b1, a2, w2, b2


def residual_unit_forward_ntc(x_ntc, params, *, dilation=1, tile_t=1024,
                              mxu_dtype=jnp.bfloat16, conv_mode="auto"):
    """ResidualUnit forward on channels-last input (B, T, C) -> (B, T, C)."""
    B, T, C = x_ntc.shape
    K = K_SIZE
    pad = (K - 1) * dilation // 2            # 'same' -> out length == T, crop == 0
    HALO8 = max(8, _round_up(pad, 8))        # aligned halo DMA height
    Cp = _round_up(C, 128)                   # lane-dense channels
    TT = max(_round_up(min(T, tile_t), 8), HALO8)
    n_t = pl.cdiv(T, TT)
    T_halo = (n_t + 1) * TT + HALO8
    WIN = TT + 2 * HALO8

    # Single prep copy: left pad of TT zero rows (so the body tile of grid step
    # t is block index t+1 of a Blocked spec), right pad covering the last halo
    # + time slack, channel pad to Cp.  Zero rows double as the conv's 'same'
    # zero padding, so no in-kernel boundary masking is needed.
    # TODO(synk): with a fully channels-last, TT-aligned pipeline this pad (and
    # the NCL transpose in residual_unit_forward) can be removed entirely.
    xf = x_ntc.astype(jnp.float32)
    x_prep = jnp.pad(xf, ((0, 0), (TT, T_halo - TT - T), (0, Cp - C)))

    a1p, w1p, b1p, a2p, w2p, b2p = _prepare_params(params, C, Cp, K, mxu_dtype)

    if conv_mode == "auto":
        use_im2col = (Cp <= 128) and _wide_mxu()
    elif conv_mode == "im2col":
        use_im2col = True
    elif conv_mode == "per_tap":
        use_im2col = False
    else:
        raise ValueError(f"unknown conv_mode {conv_mode!r}")

    mxu_bytes = jnp.dtype(mxu_dtype).itemsize
    kern = functools.partial(_residual_unit_kernel, K=K, dilation=dilation,
                             pad=pad, TT=TT, HALO8=HALO8,
                             use_im2col=use_im2col, mxu_dtype=mxu_dtype)

    out = pl.pallas_call(
        kern,
        grid=(B, n_t),
        in_specs=[
            pl.BlockSpec(memory_space=pl.ANY),                        # halo source (manual DMA)
            pl.BlockSpec((None, TT, Cp), lambda b, t: (b, t + 1, 0)),  # body / residual tile
            pl.BlockSpec((1, Cp), lambda b, t: (0, 0)),                # alpha1
            # TODO(synk): for C >= ~768 add pipeline_mode=pl.Buffered(1) or a
            # Cout grid axis so the (already bf16) w1 is not double-buffered.
            pl.BlockSpec((K * Cp, Cp), lambda b, t: (0, 0)),           # w1 (tap-major)
            pl.BlockSpec((1, Cp), lambda b, t: (0, 0)),                # b1
            pl.BlockSpec((1, Cp), lambda b, t: (0, 0)),                # alpha2
            pl.BlockSpec((Cp, Cp), lambda b, t: (0, 0)),               # w2
            pl.BlockSpec((1, Cp), lambda b, t: (0, 0)),                # b2
        ],
        out_specs=pl.BlockSpec((None, TT, Cp), lambda b, t: (b, t, 0)),
        out_shape=jax.ShapeDtypeStruct((B, n_t * TT, Cp), jnp.float32),
        scratch_shapes=[
            pltpu.VMEM((WIN, Cp), jnp.float32),
            pltpu.SemaphoreType.DMA((2,)),
        ],
        compiler_params=pltpu.CompilerParams(
            dimension_semantics=("parallel", "parallel"),
            vmem_limit_bytes=_vmem_limit_bytes(TT, Cp, K, WIN, mxu_bytes,
                                               use_im2col),
        ),
    )(x_prep, x_prep, a1p, w1p, b1p, a2p, w2p, b2p)

    return out[:, :T, :C]


def residual_unit_forward(x_ncl, params, **kwargs):
    """PyTorch-layout entry point: (B, C, T) -> (B, C, T)."""
    # TODO(synk): in a full DAC stack keep activations channels-last between
    # layers so this NCL<->NTC transpose happens only once at the model edge.
    y = residual_unit_forward_ntc(jnp.transpose(x_ncl, (0, 2, 1)), params, **kwargs)
    return jnp.transpose(y, (0, 2, 1))


# ----------------------------------------------------------------------------
# Parameters + plain-JAX reference (for correctness checking)
# ----------------------------------------------------------------------------
def init_residual_unit(key, dim, K=K_SIZE):
    # WNConv1d weight-norm (g * v / ||v||) is folded into effective weights.
    k1, k2, k3, k4, k5, k6 = jax.random.split(key, 6)
    return {
        "alpha1": 0.5 + jax.random.uniform(k3, (1, dim), jnp.float32),
        "w1": jax.random.normal(k1, (K, dim, dim), jnp.float32) / np.sqrt(K * dim),
        "b1": 0.01 * jax.random.normal(k4, (1, dim), jnp.float32),
        "alpha2": 0.5 + jax.random.uniform(k5, (1, dim), jnp.float32),
        "w2": jax.random.normal(k2, (dim, dim), jnp.float32) / np.sqrt(dim),
        "b2": 0.01 * jax.random.normal(k6, (1, dim), jnp.float32),
    }


def residual_unit_reference(x_ncl, params, dilation):
    B, C, T = x_ncl.shape
    K = K_SIZE
    pad = (K - 1) * dilation // 2

    def snake(u, a):                       # u: (B, C, T), a: (1, C, 1)
        return u + (1.0 / (a + 1e-9)) * jnp.sin(a * u) ** 2

    a1 = params["alpha1"].reshape(1, C, 1)
    a2 = params["alpha2"].reshape(1, C, 1)
    w1_oik = jnp.transpose(params["w1"], (2, 1, 0))           # (Cout, Cin, K)
    w2_oik = jnp.transpose(params["w2"], (1, 0))[:, :, None]   # (Cout, Cin, 1)
    b1 = params["b1"].reshape(-1)
    b2 = params["b2"].reshape(-1)

    y = snake(x_ncl, a1)
    y = jax.lax.conv_general_dilated(
        y, w1_oik, window_strides=(1,), padding=[(pad, pad)],
        rhs_dilation=(dilation,), dimension_numbers=("NCH", "OIH", "NCH"),
        precision=jax.lax.Precision.HIGHEST) + b1[None, :, None]
    y = snake(y, a2)
    y = jax.lax.conv_general_dilated(
        y, w2_oik, window_strides=(1,), padding=[(0, 0)],
        dimension_numbers=("NCH", "OIH", "NCH"),
        precision=jax.lax.Precision.HIGHEST) + b2[None, :, None]
    # pad = (x.shape[-1] - y.shape[-1]) // 2 == 0 here ('same' conv)
    return x_ncl + y


# ----------------------------------------------------------------------------
if __name__ == "__main__":
    root = jax.random.PRNGKey(0)
    B, T = 2, 64
    configs = [
        # (dim, dilation, tile_t, mxu_dtype, conv_mode, tol)
        (16, 1, 16, jnp.bfloat16, "auto", 5e-2),     # multi-tile, real halo data
        (16, 3, 16, jnp.bfloat16, "auto", 5e-2),
        (16, 9, 16, jnp.bfloat16, "auto", 5e-2),
        (128, 1, 16, jnp.float32, "im2col", 1e-2),   # f32 MXU, tighter tolerance
        (128, 3, 16, jnp.float32, "per_tap", 1e-2),
        (128, 9, 1024, jnp.float32, "per_tap", 1e-2),  # single-tile path
        (128, 3, 16, jnp.bfloat16, "per_tap", 5e-2),
        (16, 9, 1024, jnp.bfloat16, "im2col", 5e-2),
    ]
    for dim, dilation, tile_t, mdt, mode, tol in configs:
        pkey, xkey = jax.random.split(jax.random.fold_in(root, dim * 100 + dilation))
        params = init_residual_unit(pkey, dim)
        x = jax.random.normal(xkey, (B, dim, T), jnp.float32)
        y = jax.block_until_ready(
            residual_unit_forward(x, params, dilation=dilation, tile_t=tile_t,
                                  mxu_dtype=mdt, conv_mode=mode))
        assert y.shape == (B, dim, T), (y.shape, dim, dilation)
        assert bool(jnp.all(jnp.isfinite(y)))
        y_ref = residual_unit_reference(x, params, dilation)
        np.testing.assert_allclose(np.asarray(y), np.asarray(y_ref),
                                   rtol=tol, atol=tol)
    print("KERNEL_OK")
</pallas_src>

<mosaic_0001>
module attributes {stable_mosaic.version = 11 : i64} {
  func.func @_residual_unit_kernel(%arg0: i32, %arg1: i32, %arg2: memref<2x88x128xf32, #tpu.memory_space<any>>, %arg3: memref<1x16x128xf32, #tpu.memory_space<vmem>>, %arg4: memref<1x128xf32, #tpu.memory_space<vmem>>, %arg5: memref<896x128xbf16, #tpu.memory_space<vmem>>, %arg6: memref<1x128xf32, #tpu.memory_space<vmem>>, %arg7: memref<1x128xf32, #tpu.memory_space<vmem>>, %arg8: memref<128x128xbf16, #tpu.memory_space<vmem>>, %arg9: memref<1x128xf32, #tpu.memory_space<vmem>>, %arg10: memref<1x16x128xf32, #tpu.memory_space<vmem>>, %arg11: memref<32x128xf32, #tpu.memory_space<vmem>>, %arg12: memref<2x!tpu.dma_semaphore, #tpu.memory_space<semaphore_mem>>) attributes {dimension_semantics = [#tpu.dimension_semantics<parallel>, #tpu.dimension_semantics<parallel>], iteration_bounds = array<i64: 2, 4>, scalar_prefetch = 0 : i64, scratch_operands = 2 : i64, tpu.core_type = #tpu.core_type<tc>, window_params = [{}, {transform_indices = @transform_1, window_bounds = array<i64: 1, 16, 128>}, {pipeline_mode = #tpu.pipeline_mode<synchronous>, transform_indices = @transform_2, window_bounds = array<i64: 1, 128>}, {pipeline_mode = #tpu.pipeline_mode<synchronous>, transform_indices = @transform_3, window_bounds = array<i64: 896, 128>}, {pipeline_mode = #tpu.pipeline_mode<synchronous>, transform_indices = @transform_4, window_bounds = array<i64: 1, 128>}, {pipeline_mode = #tpu.pipeline_mode<synchronous>, transform_indices = @transform_5, window_bounds = array<i64: 1, 128>}, {pipeline_mode = #tpu.pipeline_mode<synchronous>, transform_indices = @transform_6, window_bounds = array<i64: 128, 128>}, {pipeline_mode = #tpu.pipeline_mode<synchronous>, transform_indices = @transform_7, window_bounds = array<i64: 1, 128>}, {transform_indices = @transform_8, window_bounds = array<i64: 1, 16, 128>}]} {
    %c1_i32 = arith.constant 1 : i32
    %0 = arith.addi %arg1, %c1_i32 : i32
    %c16_i32 = arith.constant 16 : i32
    %1 = arith.muli %0, %c16_i32 : i32
    %c8_i32 = arith.constant 8 : i32
    %2 = arith.subi %1, %c8_i32 : i32
    %3 = tpu.assume_multiple %2, 8 : i32
    %c2_i32 = arith.constant 2 : i32
    %4 = arith.addi %arg1, %c2_i32 : i32
    %c16_i32_0 = arith.constant 16 : i32
    %5 = arith.muli %4, %c16_i32_0 : i32
    %6 = tpu.assume_multiple %5, 8 : i32
    %c0_i32 = arith.constant 0 : i32
    %c0_i32_1 = arith.constant 0 : i32
    %7 = tpu.memref_slice %arg2[%arg0, %3, %c0_i32_1] : memref<2x88x128xf32, #tpu.memory_space<any>> -> memref<1x8x128xf32, #tpu.memory_space<any>>
    %8 = tpu.memref_squeeze %7 : memref<1x8x128xf32, #tpu.memory_space<any>> -> memref<8x128xf32, #tpu.memory_space<any>>
    %c0_i32_2 = arith.constant 0 : i32
    %c0_i32_3 = arith.constant 0 : i32
    %9 = tpu.memref_slice %arg11[%c0_i32_2, %c0_i32_3] : memref<32x128xf32, #tpu.memory_space<vmem>> -> memref<8x128xf32, #tpu.memory_space<vmem>>
    %10 = tpu.memref_slice %arg12[%c0_i32] : memref<2x!tpu.dma_semaphore, #tpu.memory_space<semaphore_mem>> -> memref<1x!tpu.dma_semaphore, #tpu.memory_space<semaphore_mem>>
    %11 = tpu.memref_squeeze %10 : memref<1x!tpu.dma_semaphore, #tpu.memory_space<semaphore_mem>> -> memref<!tpu.dma_semaphore, #tpu.memory_space<semaphore_mem>>
    tpu.enqueue_dma source(%8 : memref<8x128xf32, #tpu.memory_space<any>>) target(%9 : memref<8x128xf32, #tpu.memory_space<vmem>>) target_semaphore(%11 : memref<!tpu.dma_semaphore, #tpu.memory_space<semaphore_mem>>)
    %c1_i32_4 = arith.constant 1 : i32
    %c0_i32_5 = arith.constant 0 : i32
    %12 = tpu.memref_slice %arg2[%arg0, %6, %c0_i32_5] : memref<2x88x128xf32, #tpu.memory_space<any>> -> memref<1x8x128xf32, #tpu.memory_space<any>>
    %13 = tpu.memref_squeeze %12 : memref<1x8x128xf32, #tpu.memory_space<any>> -> memref<8x128xf32, #tpu.memory_space<any>>
    %c24_i32 = arith.constant 24 : i32
    %c0_i32_6 = arith.constant 0 : i32
    %14 = tpu.memref_slice %arg11[%c24_i32, %c0_i32_6] : memref<32x128xf32, #tpu.memory_space<vmem>> -> memref<8x128xf32, #tpu.memory_space<vmem>>
    %15 = tpu.memref_slice %arg12[%c1_i32_4] : memref<2x!tpu.dma_semaphore, #tpu.memory_space<semaphore_mem>> -> memref<1x!tpu.dma_semaphore, #tpu.memory_space<semaphore_mem>>
    %16 = tpu.memref_squeeze %15 : memref<1x!tpu.dma_semaphore, #tpu.memory_space<semaphore_mem>> -> memref<!tpu.dma_semaphore, #tpu.memory_space<semaphore_mem>>
    tpu.enqueue_dma source(%13 : memref<8x128xf32, #tpu.memory_space<any>>) target(%14 : memref<8x128xf32, #tpu.memory_space<vmem>>) target_semaphore(%16 : memref<!tpu.dma_semaphore, #tpu.memory_space<semaphore_mem>>)
    %c0 = arith.constant 0 : index
    %c0_7 = arith.constant 0 : index
    %17 = vector.load %arg4[%c0, %c0_7] : memref<1x128xf32, #tpu.memory_space<vmem>>, vector<1x128xf32>
    %cst = arith.constant 9.99999971E-10 : f32
    %18 = vector.broadcast %cst : f32 to vector<1x128xf32>
    %19 = arith.addf %17, %18 : vector<1x128xf32>
    %cst_8 = arith.constant 5.000000e-01 : f32
    %20 = vector.broadcast %cst_8 : f32 to vector<1x128xf32>
    %21 = arith.divf %20, %19 : vector<1x128xf32>
    %cst_9 = arith.constant 2.000000e+00 : f32
    %22 = vector.broadcast %cst_9 : f32 to vector<1x128xf32>
    %23 = arith.mulf %22, %17 : vector<1x128xf32>
    %c0_10 = arith.constant 0 : index
    %c0_11 = arith.constant 0 : index
    %c0_12 = arith.constant 0 : index
    %24 = vector.load %arg3[%c0_10, %c0_11, %c0_12] : memref<1x16x128xf32, #tpu.memory_space<vmem>>, vector<1x16x128xf32>
    %25 = vector.shape_cast %24 : vector<1x16x128xf32> to vector<16x128xf32>
    %26 = vector.broadcast %21 : vector<1x128xf32> to vector<16x128xf32>
    %27 = arith.addf %25, %26 : vector<16x128xf32>
    %28 = vector.broadcast %23 : vector<1x128xf32> to vector<16x128xf32>
    %29 = arith.mulf %28, %25 : vector<16x128xf32>
    %30 = math.cos %29 : vector<16x128xf32>
    %31 = vector.broadcast %21 : vector<1x128xf32> to vector<16x128xf32>
    %32 = arith.mulf %31, %30 : vector<16x128xf32>
    %33 = arith.subf %27, %32 : vector<16x128xf32>
    %c8 = arith.constant 8 : index
    %c0_13 = arith.constant 0 : index
    %34 = vector.load %arg11[%c8, %c0_13] : memref<32x128xf32, #tpu.memory_space<vmem>>, vector<16x128xf32>
    tpu.vector_store %arg11[%c8, %c0_13], %33 {strides = array<i32>} : memref<32x128xf32, #tpu.memory_space<vmem>>, vector<16x128xf32>,
    %c0_i32_14 = arith.constant 0 : i32
    %c0_i32_15 = arith.constant 0 : i32
    %35 = tpu.memref_slice %arg2[%arg0, %3, %c0_i32_15] : memref<2x88x128xf32, #tpu.memory_space<any>> -> memref<1x8x128xf32, #tpu.memory_space<any>>
    %36 = tpu.memref_squeeze %35 : memref<1x8x128xf32, #tpu.memory_space<any>> -> memref<8x128xf32, #tpu.memory_space<any>>
    %c0_i32_16 = arith.constant 0 : i32
    %c0_i32_17 = arith.constant 0 : i32
    %37 = tpu.memref_slice %arg11[%c0_i32_16, %c0_i32_17] : memref<32x128xf32, #tpu.memory_space<vmem>> -> memref<8x128xf32, #tpu.memory_space<vmem>>
    %38 = tpu.memref_slice %arg12[%c0_i32_14] : memref<2x!tpu.dma_semaphore, #tpu.memory_space<semaphore_mem>> -> memref<1x!tpu.dma_semaphore, #tpu.memory_space<semaphore_mem>>
    %39 = tpu.memref_squeeze %38 : memref<1x!tpu.dma_semaphore, #tpu.memory_space<semaphore_mem>> -> memref<!tpu.dma_semaphore, #tpu.memory_space<semaphore_mem>>
    tpu.wait_dma2 semaphore(%39 : memref<!tpu.dma_semaphore, #tpu.memory_space<semaphore_mem>>) src(%36 : memref<8x128xf32, #tpu.memory_space<any>>) dst(%37 : memref<8x128xf32, #tpu.memory_space<vmem>>)
    %c1_i32_18 = arith.constant 1 : i32
    %c0_i32_19 = arith.constant 0 : i32
    %40 = tpu.memref_slice %arg2[%arg0, %6, %c0_i32_19] : memref<2x88x128xf32, #tpu.memory_space<any>> -> memref<1x8x128xf32, #tpu.memory_space<any>>
    %41 = tpu.memref_squeeze %40 : memref<1x8x128xf32, #tpu.memory_space<any>> -> memref<8x128xf32, #tpu.memory_space<any>>
    %c24_i32_20 = arith.constant 24 : i32
    %c0_i32_21 = arith.constant 0 : i32
    %42 = tpu.memref_slice %arg11[%c24_i32_20, %c0_i32_21] : memref<32x128xf32, #tpu.memory_space<vmem>> -> memref<8x128xf32, #tpu.memory_space<vmem>>
    %43 = tpu.memref_slice %arg12[%c1_i32_18] : memref<2x!tpu.dma_semaphore, #tpu.memory_space<semaphore_mem>> -> memref<1x!tpu.dma_semaphore, #tpu.memory_space<semaphore_mem>>
    %44 = tpu.memref_squeeze %43 : memref<1x!tpu.dma_semaphore, #tpu.memory_space<semaphore_mem>> -> memref<!tpu.dma_semaphore, #tpu.memory_space<semaphore_mem>>
    tpu.wait_dma2 semaphore(%44 : memref<!tpu.dma_semaphore, #tpu.memory_space<semaphore_mem>>) src(%41 : memref<8x128xf32, #tpu.memory_space<any>>) dst(%42 : memref<8x128xf32, #tpu.memory_space<vmem>>)
    %c0_22 = arith.constant 0 : index
    %c0_23 = arith.constant 0 : index
    %45 = vector.load %arg11[%c0_22, %c0_23] : memref<32x128xf32, #tpu.memory_space<vmem>>, vector<8x128xf32>
    %46 = vector.broadcast %21 : vector<1x128xf32> to vector<8x128xf32>
    %47 = arith.addf %45, %46 : vector<8x128xf32>
    %48 = vector.broadcast %23 : vector<1x128xf32> to vector<8x128xf32>
    %49 = arith.mulf %48, %45 : vector<8x128xf32>
    %50 = math.cos %49 : vector<8x128xf32>
    %51 = vector.broadcast %21 : vector<1x128xf32> to vector<8x128xf32>
    %52 = arith.mulf %51, %50 : vector<8x128xf32>
    %53 = arith.subf %47, %52 : vector<8x128xf32>
    %c0_24 = arith.constant 0 : index
    %c0_25 = arith.constant 0 : index
    %54 = vector.load %arg11[%c0_24, %c0_25] : memref<32x128xf32, #tpu.memory_space<vmem>>, vector<8x128xf32>
    tpu.vector_store %arg11[%c0_24, %c0_25], %53 {strides = array<i32>} : memref<32x128xf32, #tpu.memory_space<vmem>>, vector<8x128xf32>,
    %c24 = arith.constant 24 : index
    %c0_26 = arith.constant 0 : index
    %55 = vector.load %arg11[%c24, %c0_26] : memref<32x128xf32, #tpu.memory_space<vmem>>, vector<8x128xf32>
    %56 = vector.broadcast %21 : vector<1x128xf32> to vector<8x128xf32>
    %57 = arith.addf %55, %56 : vector<8x128xf32>
    %58 = vector.broadcast %23 : vector<1x128xf32> to vector<8x128xf32>
    %59 = arith.mulf %58, %55 : vector<8x128xf32>
    %60 = math.cos %59 : vector<8x128xf32>
    %61 = vector.broadcast %21 : vector<1x128xf32> to vector<8x128xf32>
    %62 = arith.mulf %61, %60 : vector<8x128xf32>
    %63 = arith.subf %57, %62 : vector<8x128xf32>
    %c24_27 = arith.constant 24 : index
    %c0_28 = arith.constant 0 : index
    %64 = vector.load %arg11[%c24_27, %c0_28] : memref<32x128xf32, #tpu.memory_space<vmem>>, vector<8x128xf32>
    tpu.vector_store %arg11[%c24_27, %c0_28], %63 {strides = array<i32>} : memref<32x128xf32, #tpu.memory_space<vmem>>, vector<8x128xf32>,
    %c0_29 = arith.constant 0 : index
    %c0_30 = arith.constant 0 : index
    %65 = vector.load %arg11[%c0_29, %c0_30] : memref<32x128xf32, #tpu.memory_space<vmem>>, vector<32x128xf32>
    %66 = vector.extract_strided_slice %65 {offsets = [5, 0], sizes = [16, 128], strides = [1, 1]} : vector<32x128xf32> to vector<16x128xf32>
    %67 = vector.extract_strided_slice %65 {offsets = [6, 0], sizes = [16, 128], strides = [1, 1]} : vector<32x128xf32> to vector<16x128xf32>
    %68 = vector.extract_strided_slice %65 {offsets = [7, 0], sizes = [16, 128], strides = [1, 1]} : vector<32x128xf32> to vector<16x128xf32>
    %69 = vector.extract_strided_slice %65 {offsets = [8, 0], sizes = [16, 128], strides = [1, 1]} : vector<32x128xf32> to vector<16x128xf32>
    %70 = vector.extract_strided_slice %65 {offsets = [9, 0], sizes = [16, 128], strides = [1, 1]} : vector<32x128xf32> to vector<16x128xf32>
    %71 = vector.extract_strided_slice %65 {offsets = [10, 0], sizes = [16, 128], strides = [1, 1]} : vector<32x128xf32> to vector<16x128xf32>
    %72 = vector.extract_strided_slice %65 {offsets = [11, 0], sizes = [16, 128], strides = [1, 1]} : vector<32x128xf32> to vector<16x128xf32>
    %73 = tpu.concatenate %66, %67, %68, %69, %70, %71, %72 in 1 : vector<16x128xf32>, vector<16x128xf32>, vector<16x128xf32>, vector<16x128xf32>, vector<16x128xf32>, vector<16x128xf32>, vector<16x128xf32> -> vector<16x896xf32>
    %74 = arith.truncf %73 : vector<16x896xf32> to vector<16x896xbf16>
    %c0_31 = arith.constant 0 : index
    %c0_32 = arith.constant 0 : index
    %75 = vector.load %arg5[%c0_31, %c0_32] : memref<896x128xbf16, #tpu.memory_space<vmem>>, vector<896x128xbf16>
    %cst_33 = arith.constant dense<0.000000e+00> : vector<16x128xf32>
    %76 = tpu.matmul %74, %75, %cst_33 {dimension_numbers = #tpu.dot_dimension_numbers<[1], [0], [0], [1], [0, 0, 1, 1], [], []>} : vector<16x896xbf16>, vector<896x128xbf16>, vector<16x128xf32> -> vector<16x128xf32>
    %c0_34 = arith.constant 0 : index
    %c0_35 = arith.constant 0 : index
    %77 = vector.load %arg6[%c0_34, %c0_35] : memref<1x128xf32, #tpu.memory_space<vmem>>, vector<1x128xf32>
    %78 = vector.broadcast %77 : vector<1x128xf32> to vector<16x128xf32>
    %79 = arith.addf %76, %78 : vector<16x128xf32>
    %c0_36 = arith.constant 0 : index
    %c0_37 = arith.constant 0 : index
    %80 = vector.load %arg7[%c0_36, %c0_37] : memref<1x128xf32, #tpu.memory_space<vmem>>, vector<1x128xf32>
    %cst_38 = arith.constant 9.99999971E-10 : f32
    %81 = vector.broadcast %cst_38 : f32 to vector<1x128xf32>
    %82 = arith.addf %80, %81 : vector<1x128xf32>
    %cst_39 = arith.constant 5.000000e-01 : f32
    %83 = vector.broadcast %cst_39 : f32 to vector<1x128xf32>
    %84 = arith.divf %83, %82 : vector<1x128xf32>
    %cst_40 = arith.constant 2.000000e+00 : f32
    %85 = vector.broadcast %cst_40 : f32 to vector<1x128xf32>
    %86 = arith.mulf %85, %80 : vector<1x128xf32>
    %87 = vector.broadcast %84 : vector<1x128xf32> to vector<16x128xf32>
    %88 = arith.addf %79, %87 : vector<16x128xf32>
    %89 = vector.broadcast %86 : vector<1x128xf32> to vector<16x128xf32>
    %90 = arith.mulf %89, %79 : vector<16x128xf32>
    %91 = math.cos %90 : vector<16x128xf32>
    %92 = vector.broadcast %84 : vector<1x128xf32> to vector<16x128xf32>
    %93 = arith.mulf %92, %91 : vector<16x128xf32>
    %94 = arith.subf %88, %93 : vector<16x128xf32>
    %95 = arith.truncf %94 : vector<16x128xf32> to vector<16x128xbf16>
    %c0_41 = arith.constant 0 : index
    %c0_42 = arith.constant 0 : index
    %96 = vector.load %arg8[%c0_41, %c0_42] : memref<128x128xbf16, #tpu.memory_space<vmem>>, vector<128x128xbf16>
    %cst_43 = arith.constant dense<0.000000e+00> : vector<16x128xf32>
    %97 = tpu.matmul %95, %96, %cst_43 {dimension_numbers = #tpu.dot_dimension_numbers<[1], [0], [0], [1], [0, 0, 1, 1], [], []>} : vector<16x128xbf16>, vector<128x128xbf16>, vector<16x128xf32> -> vector<16x128xf32>
    %c0_44 = arith.constant 0 : index
    %c0_45 = arith.constant 0 : index
    %98 = vector.load %arg9[%c0_44, %c0_45] : memref<1x128xf32, #tpu.memory_space<vmem>>, vector<1x128xf32>
    %99 = vector.broadcast %98 : vector<1x128xf32> to vector<16x128xf32>
    %100 = arith.addf %97, %99 : vector<16x128xf32>
    %101 = arith.addf %100, %25 : vector<16x128xf32>
    %c0_46 = arith.constant 0 : index
    %c0_47 = arith.constant 0 : index
    %c0_48 = arith.constant 0 : index
    %102 = vector.load %arg10[%c0_46, %c0_47, %c0_48] : memref<1x16x128xf32, #tpu.memory_space<vmem>>, vector<1x16x128xf32>
    %103 = vector.shape_cast %102 : vector<1x16x128xf32> to vector<16x128xf32>
    %104 = vector.shape_cast %101 : vector<16x128xf32> to vector<1x16x128xf32>
    tpu.vector_store %arg10[%c0_46, %c0_47, %c0_48], %104 {strides = array<i32>} : memref<1x16x128xf32, #tpu.memory_space<vmem>>, vector<1x16x128xf32>,
    return
  }
  func.func @transform_1(%arg0: i32, %arg1: i32) -> (i32, i32, i32) {
    %c1_i32 = arith.constant 1 : i32
    %0 = arith.addi %arg1, %c1_i32 : i32
    %c0_i32 = arith.constant 0 : i32
    %c0_i32_0 = arith.constant 0 : i32
    return %arg0, %0, %c0_i32 : i32, i32, i32
  }
  func.func @transform_2(%arg0: i32, %arg1: i32) -> (i32, i32) {
    %c0_i32 = arith.constant 0 : i32
    %c0_i32_0 = arith.constant 0 : i32
    %c0_i32_1 = arith.constant 0 : i32
    return %c0_i32, %c0_i32_0 : i32, i32
  }
  func.func @transform_3(%arg0: i32, %arg1: i32) -> (i32, i32) {
    %c0_i32 = arith.constant 0 : i32
    %c0_i32_0 = arith.constant 0 : i32
    %c0_i32_1 = arith.constant 0 : i32
    return %c0_i32, %c0_i32_0 : i32, i32
  }
  func.func @transform_4(%arg0: i32, %arg1: i32) -> (i32, i32) {
    %c0_i32 = arith.constant 0 : i32
    %c0_i32_0 = arith.constant 0 : i32
    %c0_i32_1 = arith.constant 0 : i32
    return %c0_i32, %c0_i32_0 : i32, i32
  }
  func.func @transform_5(%arg0: i32, %arg1: i32) -> (i32, i32) {
    %c0_i32 = arith.constant 0 : i32
    %c0_i32_0 = arith.constant 0 : i32
    %c0_i32_1 = arith.constant 0 : i32
    return %c0_i32, %c0_i32_0 : i32, i32
  }
  func.func @transform_6(%arg0: i32, %arg1: i32) -> (i32, i32) {
    %c0_i32 = arith.constant 0 : i32
    %c0_i32_0 = arith.constant 0 : i32
    %c0_i32_1 = arith.constant 0 : i32
    return %c0_i32, %c0_i32_0 : i32, i32
  }
  func.func @transform_7(%arg0: i32, %arg1: i32) -> (i32, i32) {
    %c0_i32 = arith.constant 0 : i32
    %c0_i32_0 = arith.constant 0 : i32
    %c0_i32_1 = arith.constant 0 : i32
    return %c0_i32, %c0_i32_0 : i32, i32
  }
  func.func @transform_8(%arg0: i32, %arg1: i32) -> (i32, i32, i32) {
    %c0_i32 = arith.constant 0 : i32
    %c0_i32_0 = arith.constant 0 : i32
    return %arg0, %arg1, %c0_i32 : i32, i32, i32
  }
}

</mosaic_0001>

<bundles_post_ra>
// kernel: tpu_custom_call.1
= control target key start
LH: loop header
LB: loop body
LE: loop exit
PB: predicated region body
PF: predicated region fallthrough
CT: control target
= control target key end

     0   :  { %s3774_s0 = inlined_call_operand.hbm [shape: f32[2,88,128], index: 0, kind: input, shape index: {}]   ;;  %s3775_s1 = inlined_call_operand.hbm [shape: f32[2,88,128], index: 1, kind: input, shape index: {}]   ;;  %s3776_s2 = inlined_call_operand.vmem [shape: f32[1,128], index: 2, kind: input, shape index: {}]   ;;  %s3777_s3 = inlined_call_operand.hbm [shape: bf16[896,128], index: 3, kind: input, shape index: {}]   ;;  %s3778_s4 = inlined_call_operand.vmem [shape: f32[1,128], index: 4, kind: input, shape index: {}]   ;;  %s3779_s5 = inlined_call_operand.vmem [shape: f32[1,128], index: 5, kind: input, shape index: {}]   ;;  %s3780_s6 = inlined_call_operand.hbm [shape: bf16[128,128], index: 6, kind: input, shape index: {}]   ;;  %s3781_s7 = inlined_call_operand.vmem [shape: f32[1,128], index: 7, kind: input, shape index: {}]   ;;  %s3782_s8 = inlined_call_operand.hbm [shape: f32[2,64,128], index: 8, kind: output, shape index: {}]  }
   0x1   :  { %3796 = sst [smem:[#allocation30_spill]] %s3776_s2 }
   0x2   :  { %3797 = sst [smem:[#allocation31_spill]] %s3777_s3 }
   0x3   :  { %3798 = sst [smem:[#allocation32_spill]] %s3778_s4 }
   0x4   :  { %3799 = sst [smem:[#allocation33_spill]] %s3779_s5 }
   0x5   :  { %3800 = sst [smem:[#allocation34_spill]] %s3780_s6 }
   0x6   :  { %3801 = sst [smem:[#allocation35_spill]] %s3781_s7 }
   0x7   :  { %3802 = sst [smem:[#allocation36_spill]] %s3782_s8 }
   0x8   :  { %13 = vsyncpa [#allocation5], 0 }
   0x9   :  { %15 = vsyncpa [#allocation5 + $0x1], 0 }
   0xa   :  { %16 = vsyncpa [#allocation8], 0 }
   0xb   :  { %17 = vsyncpa [#allocation6], 0 }
   0xc   :  { %19 = vsyncpa [#allocation6 + $0x1], 0  ;;  %s3007_s27 = smov 0   ;;  %s3009_s28 = smov 0  }
   0xd   :  { %s3011_s29 = smov 0   ;;  %s3013_s30 = smov 0  }
   0xe   :  { %s3015_s9 = smov 0   ;;  %s3017_s10 = smov 0  }
   0xf   :  { %s3019_s11 = smov 0   ;;  %s3021_s12 = smov 0  }
  0x10   :  { %s3023_s13 = smov 0   ;;  %s3025_s14 = smov 0  }
  0x11   :  { %s3027_s15 = smov 0  }
  0x12 LB: > { %3803 = sst [smem:[#allocation22_spill]] %s2900_s27  ;;  %s2173_s16 = sadd.s32 4294967295, %s2940_s15   ;;  %s2940_s15 = sphi %s3027_s15, %s25_s15   ;;  %s2936_s14 = sphi %s3025_s14, %s3857_s14   ;;  %s2932_s13 = sphi %s3023_s13, %s3856_s13   ;;  %s2928_s12 = sphi %s3021_s12, %s3855_s12   ;;  %s2924_s11 = sphi %s3019_s11, %s3854_s11   ;;  %s2920_s10 = sphi %s3017_s10, %s3853_s10   ;;  %s2916_s9 = sphi %s3015_s9, %s3852_s9   ;;  %s2912_s30 = sphi %s3013_s30, %s3851_s30   ;;  %s2908_s29 = sphi %s3011_s29, %s3844_s29   ;;  %s2904_s28 = sphi %s3009_s28, %s3850_s28   ;;  %s2900_s27 = sphi %s3007_s27, %s3849_s27  }
  0x13   : > { %3804 = sst [smem:[#allocation23_spill]] %s2908_s29  ;;  %s34_s18 = sadd.s32 1, %s2932_s13 }
  0x14   : > { %3805 = sst [smem:[#allocation24_spill]] %s2932_s13  ;;  %s37_s19 = sadd.s32 1, %s2936_s14 }
  0x15   : > { %p35_p0 = scmp.ge.s32.totalorder %s34_s18, 4  ;;  %s48_s20 = sadd.s32 1, %s2920_s10 }
  0x16   : > { %p55_p1 = scmp.ne.s32.totalorder %s2920_s10, %s2916_s9  ;;  %p56_p2 = scmp.eq.s32.totalorder %s2940_s15, 0 }
  0x17   : > { %s3068_s21 = scalar_select %p35_p0, 0, %s34_s18  }
  0x18   : > { %s3859_s19 = smov (!%p35_p0, %s37_s19), %s2936_s14  ;;  %p3072_p3 = por %p56_p2, %p55_p1 }
  0x19   : > { %3806 = sst [smem:[#allocation25_spill]] %s3068_s21  ;;  %s42_s22 = sadd.s32 1, %s3068_s21 }
  0x1a   : > { %s3807_s23 = scalar_select %p3072_p3, 1, 0 }
  0x1b   : > { %p39_p4 = scmp.ge.s32.totalorder %s3859_s19, 2  ;;  %s44_s24 = ssub.s32 %s34_s18, %s42_s22 }
  0x1c   : > { %p61_p5 = scmp.ne.s32.totalorder %s2916_s9, %s2912_s30  ;;  %p3077_p6 = scmp.eq.s32.totalorder %s2173_s16, 0 }
  0x1d   : > { %s3861_s19 = smov (%p39_p4, %s3859_s19), 0  ;;  %s198_s18 = ssub.s32 %s2932_s13, %s3068_s21 }
  0x1e   : > { %s3808_s25 = scalar_select %p3077_p6, 1, 0 }
  0x1f   : > { %3809 = sst [smem:[#allocation26_spill]] %s3861_s19  ;;  %p3085_p7 = por %p3077_p6, %p61_p5 }
  0x20   : > { %s43_s30 = ssub.s32 %s2936_s14, %s3861_s19  ;;  %s202_s22 = sadd.s32 1, %s2908_s29 }
  0x21   : > { %s3810_s26 = scalar_select %p3085_p7, 1, 0 }
  0x22   : > { %s45_s17 = sor.u32 %s44_s24, %s43_s30  ;;  %s199_s8 = sor.u32 %s198_s18, %s43_s30 }
  0x23   : > { %p46_p8 = scmp.eq.s32.totalorder %s45_s17, 0  ;;  %p200_p9 = scmp.eq.s32.totalorder %s199_s8, 0 }
  0x24   : > { %p212_p10 = scmp.ne.s32.totalorder %s2908_s29, %s2904_s28  ;;  %p213_p11 = scmp.eq.s32.totalorder %s2173_s16, 7 }
  0x25   : > { %s3097_s7 = scalar_select %p46_p8, %s2920_s10, %s48_s20  }
  0x26   : > { %s3100_s5 = scalar_select %p200_p9, %s2908_s29, %s202_s22  }
  0x27   : > { %3811 = sst [smem:[#allocation27_spill]] %s3097_s7  ;;  %p3102_p12 = por %p213_p11, %p212_p10 }
  0x28   : > { %3812 = sst [smem:[#allocation28_spill]] %s3100_s5  ;;  %p218_p13 = scmp.ne.s32.totalorder %s2904_s28, %s2900_s27 }
  0x29   : > { %s3813_s4 = scalar_select %p3102_p12, 1, 0 }
  0x2a   : > { %s3814_s2 = sadd.s32 4294967294, %s2940_s15   ;;  %p2175_p1 = scmp.ge.s32.totalorder %s2940_s15, 1 }
  0x2b   : > { %p219_p0 = scmp.eq.s32.totalorder %s3814_s2, 7  ;;  %p226_p2 = scmp.lt.s32.totalorder %s2940_s15, 9 }
  0x2c   : > { %s2942_s16 = smov [#allocation7]   ;;  %s2943_s2 = smov [#allocation9]  }
  0x2d   : > { %p3112_p4 = por %p219_p0, %p218_p13  ;;  %p3116_p5 = pnand %p2175_p1, %p226_p2 }
  0x2e   : > { %s241_s17 = sshll.u32 %s2942_s16, 4  ;;  %s260_s18 = sshll.u32 %s2943_s2, 4  ;;  %s242_s17 = int_to_ptr.vmem [resolvable:$true] %s241_s17  ;;  %s3128_s18 = int_to_ptr.vmem [resolvable:$true] %s260_s18 }
  0x2f   : > { %s3815_s24 = scalar_select %p3112_p4, 1, 0 }
  0x30   : > { %s3817_s8 = scalar_select %p3116_p5, 1, 0 }
  0x31   : > { %3816 = sst [smem:[#allocation29_spill]] %s3815_s24  ;;  %p2458_p8 = pneg %p3116_p5 }
  0x32   : > { %s3819_s3 = sld [smem:[#allocation31_spill]] }
  0x33   : > { %p3124_p9 = pnand %p2458_p8, %p3077_p6 }
  0x35   : > { %p2674_p11 = pneg %p3124_p9 }
  0x38   : > { %s2672_s19 = scalar_lea.hbm %s3819_s3, 7168 }
  0x39   : > { %p2673_p10 = scmp.ne.s32.totalorder %s3819_s3, %s2672_s19  ;;  %p2679_p1 = scmp.lt.u32.totalorder %s2672_s19, %s3819_s3 }
  0x3b   : > { %p2675_p13 = pnand %p2674_p11, %p2673_p10 }
  0x3d   : > { %p2676_p0 = pneg %p2675_p13 }
  0x3f   : > { %p2681_p2 = pnand %p2679_p1, %p2676_p0 }
  0x41   : > { %2684 = shalt.err (!%p2681_p2)
}
  0x42   : > { %s2685_s2 = scalar_lea.vmem %s242_s17, 7168  ;;  %p2693_p6 = scmp.lt.s32.totalorder %s242_s17, %s242_s17 }
  0x43   : > { %p2686_p8 = scmp.ne.s32.totalorder %s242_s17, %s2685_s2  ;;  %p2694_p7 = scmp.lt.s32.totalorder %s2685_s2, %s2685_s2 }
  0x45   : > { %p2688_p4 = pnand %p2686_p8, %p2674_p11  ;;  %p2695_p5 = por %p2694_p7, %p2693_p6 }
  0x47   : > { %p2689_p12 = pneg %p2688_p4 }
  0x49   : > { %p2696_p3 = pnand %p2695_p5, %p2689_p12 }
  0x4b   : > { %2699 = shalt.err (!%p2696_p3)
}
  0x4c   : > { %s2944_s21 = smov 64   ;;  %s2945_s30 = smov 4  }
  0x4d   : > { %2461 = dma.hbm_to_vmem [thread:$0]  (!%p3124_p9), %s3819_s3, 7168, %s242_s17, [#allocation8], %s2944_s21, %s2944_s21, %s2945_s30  }
  0x4e   : > { %s3820_s6 = sld [smem:[#allocation34_spill]] }
  0x54   : > { %s2700_s16 = scalar_lea.hbm %s3820_s6, 1024 }
  0x55   : > { %p2701_p4 = scmp.ne.s32.totalorder %s3820_s6, %s2700_s16  ;;  %p2707_p7 = scmp.lt.u32.totalorder %s2700_s16, %s3820_s6 }
  0x57   : > { %p2703_p3 = pnand %p2701_p4, %p2674_p11 }
  0x59   : > { %p2704_p6 = pneg %p2703_p3 }
  0x5b   : > { %p2709_p12 = pnand %p2707_p7, %p2704_p6 }
  0x5d   : > { %2712 = shalt.err (!%p2709_p12)
}
  0x5e   : > { %s2713_s17 = scalar_lea.vmem %s3128_s18, 1024  ;;  %p2721_p0 = scmp.lt.s32.totalorder %s3128_s18, %s3128_s18 }
  0x5f   : > { %p2714_p5 = scmp.ne.s32.totalorder %s3128_s18, %s2713_s17  ;;  %p2722_p1 = scmp.lt.s32.totalorder %s2713_s17, %s2713_s17 }
  0x61   : > { %p2716_p10 = pnand %p2714_p5, %p2674_p11  ;;  %p2723_p2 = por %p2722_p1, %p2721_p0 }
  0x63   : > { %p2717_p13 = pneg %p2716_p10 }
  0x65   : > { %p2724_p8 = pnand %p2723_p2, %p2717_p13 }
  0x67   : > { %2727 = shalt.err (!%p2724_p8)
}
  0x68   : > { %2464 = dma.hbm_to_vmem [thread:$0]  (!%p3124_p9), %s3820_s6, 1024, %s3128_s18, [#allocation8], %s2944_s21, %s2944_s21, %s2945_s30  }
  0x69   : > { %p2178_p4 = scmp.ge.s32.totalorder %s2940_s15, 8 }
  0x6a   : > { %p3821_p3 = scmp.ne.s32.totalorder (!%p2178_p4), %s3807_s23, 0 }
  0x6b   : > { %273 = sbr.rel (%p2178_p4) target bundleno = 145 (0x91), region = 40 }
  0x72   : > { %276 = sbr.rel (!%p3821_p3) target bundleno = 145 (0x91), region = 44  ;;  %s277_s24 = sand.u32 (%p3821_p3), 1, %s2920_s10  }
  0x73   : > { %s2295_s5 = sshll.u32 (%p3821_p3), %s2932_s13, 1  ;;  %s2179_s7 = sshll.u32 (%p3821_p3), %s277_s24, 4 }
  0x74   : > { %s3182_s19 = scalar_lea.sflag (%p3821_p3), [#allocation5], %s277_s24  ;;  %s281_s20 = scalar_lea.vmem (%p3821_p3), [#allocation4], %s2179_s7 }
  0x75   : > { %s2085_s22 = smul.u32 (%p3821_p3), 11, %s2936_s14  ;;  %s297_s16 = sshll.u32 (%p3821_p3), %s281_s20, 4  ;;  %s3185_s16 = int_to_ptr.vmem [resolvable:$true] %s297_s16 }
  0x76   : > { %s2732_s6 = scalar_lea.hbm (%p3821_p3), %s3775_s1, 2816 }
  0x77   : > { %s2086_s2 = sadd.s32 (%p3821_p3), %s2295_s5, %s2085_s22 }
  0x78   : > { %s2184_s18 = sshll.u32 (%p3821_p3), %s2086_s2, 7 }
  0x79   : > { %s2088_s23 = scalar_lea.hbm %s3775_s1, %s2184_s18 }
  0x7a   : > { %s2089_s17 = scalar_lea.hbm %s2088_s23, 256  ;;  %s2895_s27 = scalar_lea.hbm %s2088_s23, 512 }
  0x7b   : > { %p2729_p9 = scmp.ne.s32.totalorder %s2089_s17, %s2895_s27  ;;  %p2733_p11 = scmp.lt.u32.totalorder %s2089_s17, %s3775_s1 }
  0x7c   : > { %p2734_p6 = scmp.lt.u32.totalorder %s2732_s6, %s2895_s27  ;;  %p2736_p12 = scmp.lt.u32.totalorder %s2895_s27, %s2089_s17 }
  0x7e   : > { %p2735_p7 = por %p2734_p6, %p2733_p11 }
  0x80   : > { %p2737_p5 = por %p2736_p12, %p2735_p7 }
  0x82   : > { %p2738_p10 = pnand %p2737_p5, %p2729_p9 }
  0x84   : > { %2741 = shalt.err (!%p2738_p10)
}
  0x85   : > { %s2742_s5 = scalar_lea.vmem %s3185_s16, 256  ;;  %s2946_s7 = smov [#allocation4]  }
  0x86   : > { %p2743_p13 = scmp.ne.s32.totalorder %s3185_s16, %s2742_s5  ;;  %s2746_s20 = sshll.u32 %s2946_s7, 4  ;;  %s2747_s20 = int_to_ptr.vmem [resolvable:$false] %s2746_s20 }
  0x87   : > { %s2748_s3 = scalar_lea.vmem %s2747_s20, 512  ;;  %p2749_p0 = scmp.lt.s32.totalorder %s3185_s16, %s2747_s20 }
  0x88   : > { %p2750_p1 = scmp.lt.s32.totalorder %s2748_s3, %s2742_s5 }
  0x8a   : > { %p2751_p2 = por %p2750_p1, %p2749_p0 }
  0x8c   : > { %p2752_p8 = pnand %p2751_p2, %p2743_p13 }
  0x8e   : > { %2755 = shalt.err (!%p2752_p8)
}
  0x8f   : > { %s2947_s6 = smov 128   ;;  %s2948_s13 = smov 8  }
  0x90   : > { %303 = dma.hbm_to_vmem [thread:$0]  %s2089_s17, 256, %s3185_s16, %s3182_s19, %s2947_s6, %s2947_s6, %s2948_s13  }
  0x91 PF: > { %p3822_p4 = scmp.ne.s32.totalorder %s3817_s8, 0 }
  0x92   : > { %s311_s22 = sand.u32 (!%p3822_p4), 1, %s2916_s9   ;;  %p3823_p3 = scmp.ne.s32.totalorder (!%p3822_p4), %s3810_s26, 0 }
  0x93   : > { %309 = sbr.rel (%p3822_p4) target bundleno = 995 (0x3e3), region = 48  ;;  %s3204_s2 = sshll.u32 (!%p3822_p4), %s311_s22, 4 }
  0x94   : > { %s312_s18 = scalar_lea.sflag (!%p3822_p4), [#allocation5], %s311_s22  ;;  %s315_s21 = scalar_lea.vmem (!%p3822_p4), [#allocation4], %s3204_s2 }
  0x9a   : > { %2880 = dma.done.wait (%p3823_p3), %s312_s18, 256  }
  0x9b   : > { %2882 = vsyncadd (%p3823_p3), %s312_s18, 4294967040  ;;  %p3824_p9 = scmp.ne.s32.totalorder %s3808_s25, 0 }
  0x9d   : > { %2884 = dma.done.wait (%p3824_p9), [#allocation8], 8192  }
  0x9e   : > { %2886 = vsyncadd (%p3824_p9), [#allocation8], 4294959104  ;;  %s3795_s8 = sand.u32 1, %s2904_s28   ;;  %s2297_s19 = sshll.u32 %s2924_s11, 4  ;;  %v406_v0 = vlaneseq }
  0x9f   : > { %s3219_s16 = sshll.u32 %s3795_s8, 4  ;;  %s2298_s30 = sadd.s32 16, %s2297_s19 }
  0xa0   : > { %s2193_s23 = sadd.s32 4294967288, %s2298_s30  ;;  %v407_v1 = vshrl.u32 %v406_v0, 7  ;;  %s367_s26 = smul.u32 88, %s2928_s12 }
  0xa1   : > { %s2949_s17 = smov [#allocation2]   ;;  %s3825_s22 = sld [smem:[#allocation30_spill]] }
  0xa2   : > { %s378_s27 = sshll.u32 %s2949_s17, 4  ;;  %s368_s29 = sadd.s32 %s2193_s23, %s367_s26  ;;  %v3224_v2 = vsub.s32 0, %v407_v1  ;;  %s3222_s27 = int_to_ptr.vmem [resolvable:$true] %s378_s27 }
  0xa3   : > { %s2194_s25 = sshll.u32 %s368_s29, 4  ;;  %s2105_s24 = sadd.s32 %s2297_s19, %s367_s26 }
  0xa4   : > { %s370_s20 = scalar_lea.hbm %s3774_s0, %s2194_s25  ;;  %s2196_s3 = sshll.u32 %s2105_s24, 4 }
  0xa5   : > { %s2758_s18 = scalar_lea.hbm %s370_s20, 128  ;;  %s2760_s23 = scalar_lea.hbm %s3774_s0, 2816 }
  0xa6   : > { %p2759_p11 = scmp.ne.s32.totalorder %s370_s20, %s2758_s18  ;;  %p2761_p6 = scmp.lt.u32.totalorder %s370_s20, %s3774_s0 }
  0xa7   : > { %v398_v3 = vld [vmem:[%s3825_s22] sm:$0x1]  ;;  %p2762_p7 = scmp.lt.u32.totalorder %s2760_s23, %s2758_s18  ;;  %p2764_p5 = scmp.lt.u32.totalorder %s2758_s18, %s370_s20 }
  0xa9   : > { %p2763_p12 = por %p2762_p7, %p2761_p6 }
  0xab   : > { %p2765_p10 = por %p2764_p5, %p2763_p12 }
  0xad   : > { %p2766_p13 = pnand %p2765_p10, %p2759_p11 }
  0xaf   : > { %2769 = shalt.err (!%p2766_p13)  }
  0xb0   : > { %s2770_s25 = scalar_lea.vmem %s3222_s27, 128  ;;  %s2774_s24 = scalar_lea.vmem %s3222_s27, 512 }
  0xb1   : > { %p2771_p0 = scmp.ne.s32.totalorder %s3222_s27, %s2770_s25  ;;  %p2775_p1 = scmp.lt.s32.totalorder %s3222_s27, %s3222_s27 }
  0xb2   : > { %p2776_p2 = scmp.lt.s32.totalorder %s2774_s24, %s2770_s25 }
  0xb4   : > { %p2777_p8 = por %p2776_p2, %p2775_p1 }
  0xb6   : > { %p2778_p4 = pnand %p2777_p8, %p2771_p0 }
  0xb8   : > { %2781 = shalt.err (!%p2778_p4)  }
  0xb9   : > { %381 = dma.hbm_to_vmem [thread:$0]  %s370_s20, 128, %s3222_s27, [#allocation3]  ;;  %v399_v4 = vadd.f32 1e-09, %v398_v3  ;;  %v402_v5 = vmul.f32 2.0, %v398_v3  ;;  %v3255_v6 = vld [vmem:[%s315_s21] sm:$0xff] }
  0xba   : > { %s2107_s7 = scalar_lea.hbm %s3774_s0, %s2196_s3  ;;  %s2950_s6 = smov [#allocation2 + $0x18]   ;;  %v3259_v7 = vld [vmem:[%s315_s21 + $0x8] sm:$0xff] }
  0xbb   : > { %s394_s13 = sshll.u32 %s2950_s6, 4  ;;  %s2108_s22 = scalar_lea.hbm %s2107_s7, 512  ;;  %2580 = vrcp.f32 %v399_v4  ;;  %v3262_v8 = vrot.slane %v402_v5, %v3224_v2  ;;  %s395_s13 = int_to_ptr.vmem [resolvable:$true] %s394_s13 }
  0xbc   : > { %s2806_s20 = scalar_lea.hbm %s2107_s7, 640  ;;  %p2785_p9 = scmp.lt.u32.totalorder %s2108_s22, %s3774_s0 }
  0xbd   : > { %p2783_p3 = scmp.ne.s32.totalorder %s2108_s22, %s2806_s20  ;;  %p2786_p11 = scmp.lt.u32.totalorder %s2760_s23, %s2806_s20 }
  0xbe   : > { %p2788_p7 = scmp.lt.u32.totalorder %s2806_s20, %s2108_s22 }
  0xbf   : > { %p2787_p6 = por %p2786_p11, %p2785_p9 }
  0xc1   : > { %p2789_p12 = por %p2788_p7, %p2787_p6 }
  0xc3   : > { %p2790_p5 = pnand %p2789_p12, %p2783_p3 }
  0xc5   : > { %2793 = shalt.err (!%p2790_p5)  }
  0xc6   : > { %s2794_s2 = scalar_lea.vmem %s395_s13, 128  ;;  %p2799_p13 = scmp.lt.s32.totalorder %s395_s13, %s3222_s27 }
  0xc7   : > { %p2795_p10 = scmp.ne.s32.totalorder %s395_s13, %s2794_s2  ;;  %p2800_p0 = scmp.lt.s32.totalorder %s2774_s24, %s2794_s2 }
  0xc9   : > { %p2801_p1 = por %p2800_p0, %p2799_p13 }
  0xcb   : > { %p2802_p2 = pnand %p2801_p1, %p2795_p10 }
  0xcd   : > { %2805 = shalt.err (!%p2802_p2)  }
  0xce   : > { %397 = dma.hbm_to_vmem [thread:$0]  %s2108_s22, 128, %s395_s13, [#allocation3 + $0x1]  ;;  %v3276_v9 = vmul.f32 %v3262_v8, %v3255_v6  ;;  %v3280_v10 = vmul.f32 %v3262_v8, %v3259_v7  ;;  %v2581_v21 = vpop.eup %2580  ;;  %v2951_v38 = vmov 683565275   ;;  %v2952_v40 = vmov 2475754826  }
  0xcf   : > { %v401_v24 = vmul.f32 0.5, %v2581_v21  ;;  %v2953_v42 = vmov 2131351028   ;;  %v2954_v44 = vmov 2102212464   ;;  %s3402_s21 = scalar_lea.vmem [#allocation10], %s3219_s16 }
  0xd0   : > { %v421_v11 = vand.u32 2147483647, %v3276_v9  ;;  %v424_v12 = vand.u32 2139095040, %v3276_v9  ;;  %v524_v13 = vand.u32 2147483647, %v3280_v10  ;;  %v527_v14 = vand.u32 2139095040, %v3280_v10 }
  0xd1   : > { %v3291_v27 = vrot.slane %v401_v24, %v3224_v2  ;;  %v2955_v46 = vmov 920167782   ;;  %v2956_v54 = vmov 1326507024   ;;  %vm423_vm14 = vcmp.lt.s32.totalorder %v3276_v9, 0 }
  0xd2   : > { %v425_v15 = vshrl.u32 %v424_v12, 23  ;;  %v428_v16 = vand.u32 8388607, %v421_v11  ;;  %v528_v17 = vshrl.u32 %v527_v14, 23  ;;  %v531_v18 = vand.u32 8388607, %v524_v13 }
  0xd3   : > { %v3297_v33 = vadd.f32 %v3291_v27, %v3255_v6  ;;  %v3301_v34 = vadd.f32 %v3291_v27, %v3259_v7  ;;  %vm3374_vm15 = vcmp.le.f32.partialorder %v421_v11, 0.7853982 }
  0xd4   : > { %v2197_v19 = vadd.s32 4294967169, %v425_v15  ;;  %v2201_v20 = vadd.s32 4294967169, %v528_v17  ;;  %v429_v22 = vor.u32 8388608, %v428_v16  ;;  %v532_v25 = vor.u32 8388608, %v531_v18 }
  0xd6   : > { %v431_v23 = vadd.s32 1, %v2197_v19  ;;  %v534_v26 = vadd.s32 1, %v2201_v20  ;;  %v3293_v31 = vshll.u32 %v429_v22, 8  ;;  %v3303_v36 = vshll.u32 %v532_v25, 8 }
  0xd8   : > { %vm432_vm0 = vcmp.gt.s32.totalorder %v431_v23, 0  ;;  %vm535_vm1 = vcmp.gt.s32.totalorder %v534_v26, 0 }
  0xd9   : > { %v433_v28 = vsel %vm432_vm0, %v431_v23, 0  ;;  %v536_v32 = vsel %vm535_vm1, %v534_v26, 0  ;;  %vm526_vm0 = vcmp.lt.s32.totalorder %v3280_v10, 0  ;;  %vm3386_vm1 = vcmp.le.f32.partialorder %v524_v13, 0.7853982 }
  0xda   : > { %v434_v29 = vshrl.u32 %v433_v28, 5  ;;  %v435_v30 = vand.u32 31, %v433_v28  ;;  %v538_v35 = vand.u32 31, %v536_v32  ;;  %v3310_v48 = vshrl.u32 %v536_v32, 5 }
  0xdc   : > { %v436_v37 = vsub.s32 32, %v435_v30  ;;  %v438_v39 = vshll.u32 %v2951_v38, %v435_v30  ;;  %v441_v41 = vshll.u32 %v2952_v40, %v435_v30  ;;  %v444_v43 = vshll.u32 %v2953_v42, %v435_v30 }
  0xdd   : > { %v447_v45 = vshll.u32 %v2954_v44, %v435_v30  ;;  %v450_v47 = vshll.u32 %v2955_v46, %v435_v30  ;;  %vm453_vm2 = vcmp.lt.s32.totalorder %v434_v29, 1  ;;  %vm454_vm3 = vcmp.lt.s32.totalorder %v434_v29, 2 }
  0xde   : > { %v437_v49 = vshrl.u32 %v2951_v38, %v436_v37  ;;  %v439_v50 = vshrl.u32 %v2952_v40, %v436_v37  ;;  %v442_v51 = vshrl.u32 %v2953_v42, %v436_v37  ;;  %v445_v52 = vshrl.u32 %v2954_v44, %v436_v37 }
  0xdf   : > { %v448_v53 = vshrl.u32 %v2955_v46, %v436_v37  ;;  %v451_v55 = vshrl.u32 %v2956_v54, %v436_v37  ;;  %vm456_vm4 = vcmp.lt.s32.totalorder %v434_v29, 4  ;;  %v539_v59 = vsub.s32 32, %v538_v35 }
  0xe0   : > { %v440_v56 = vor.u32 %v439_v50, %v438_v39  ;;  %v443_v57 = vor.u32 %v442_v51, %v441_v41  ;;  %v446_v58 = vor.u32 %v445_v52, %v444_v43  ;;  %vm455_vm5 = vcmp.lt.s32.totalorder %v434_v29, 3 }
  0xe1   : > { %v449_v60 = vor.u32 %v448_v53, %v447_v45  ;;  %v452_v61 = vor.u32 %v451_v55, %v450_v47  ;;  %v541_v62 = vshll.u32 %v2951_v38, %v538_v35  ;;  %v544_v14 = vshll.u32 %v2952_v40, %v538_v35 }
  0xe2   : > { %v457_v63 = vsel %vm453_vm2, %v437_v49, %v440_v56  ;;  %v458_v0 = vsel %vm456_vm4, %v446_v58, 2102212464  ;;  %v461_v1 = vsel %vm453_vm2, %v440_v56, %v443_v57  ;;  %v465_v3 = vsel %vm453_vm2, %v443_v57, %v446_v58 }
  0xe3   : > { %v459_v4 = vsel %vm455_vm5, %v443_v57, %v458_v0  ;;  %v462_v5 = vsel %vm456_vm4, %v449_v60, 920167782  ;;  %v466_v12 = vsel %vm456_vm4, %v452_v61, 1326507024  ;;  %v540_v17 = vshrl.u32 %v2951_v38, %v539_v59 }
  0xe4   : > { %v463_v15 = vsel %vm455_vm5, %v446_v58, %v462_v5  ;;  %v467_v16 = vsel %vm455_vm5, %v449_v60, %v466_v12  ;;  %v542_v18 = vshrl.u32 %v2952_v40, %v539_v59  ;;  %v460_v19 = vsel %vm454_vm3, %v457_v63, %v459_v4 }
  0xe5   : > { %v464_v20 = vsel %vm454_vm3, %v461_v1, %v463_v15  ;;  %v468_v21 = vsel %vm454_vm3, %v465_v3, %v467_v16  ;;  %v545_v22 = vshrl.u32 %v2953_v42, %v539_v59  ;;  %v547_v32 = vshll.u32 %v2953_v42, %v538_v35 }
  0xe6   : > { %v3330_v23 = vmul.u32.u64.low %v3293_v31, %v468_v21  ;;  %v3331_v24 = vmul.u32.u64.high %v3293_v31, %v468_v21, %v3330_v23  ;;  %v3334_v25 = vmul.u32.u64.low %v3293_v31, %v464_v20  ;;  %v3335_v26 = vmul.u32.u64.high %v3293_v31, %v464_v20, %v3334_v25 }
  0xe7   : > { %v543_v28 = vor.u32 %v542_v18, %v541_v62  ;;  %v546_v30 = vor.u32 %v545_v22, %v544_v14  ;;  %v548_v37 = vshrl.u32 %v2954_v44, %v539_v59  ;;  %v550_v39 = vshll.u32 %v2954_v44, %v538_v35 }
  0xe8   : > { %v551_v29 = vshrl.u32 %v2955_v46, %v539_v59  ;;  %v553_v41 = vshll.u32 %v2955_v46, %v538_v35  ;;  %v554_v43 = vshrl.u32 %v2956_v54, %v539_v59  ;;  %v476_v45 = vmul.u32 %v3293_v31, %v460_v19 }
  0xe9   : > { %v549_v47 = vor.u32 %v548_v37, %v547_v32  ;;  %vm556_vm6 = vcmp.lt.s32.totalorder %v3310_v48, 1  ;;  %vm557_vm7 = vcmp.lt.s32.totalorder %v3310_v48, 2  ;;  %vm478_vm8 = vc.u32 %v3331_v24, %v3334_v25 }
  0xea   : > { %v479_v49 = vadd.s32 1, %v3335_v26  ;;  %v552_v50 = vor.u32 %v551_v29, %v550_v39  ;;  %vm558_vm9 = vcmp.lt.s32.totalorder %v3310_v48, 3  ;;  %v555_v51 = vor.u32 %v554_v43, %v553_v41 }
  0xeb   : > { %vm559_vm10 = vcmp.lt.s32.totalorder %v3310_v48, 4  ;;  %v560_v35 = vsel %vm556_vm6, %v540_v17, %v543_v28  ;;  %v564_v52 = vsel %vm556_vm6, %v543_v28, %v546_v30  ;;  %v568_v56 = vsel %vm556_vm6, %v546_v30, %v549_v47 }
  0xec   : > { %v480_v53 = vsel %vm478_vm8, %v479_v49, %v3335_v26  ;;  %v561_v31 = vsel %vm559_vm10, %v549_v47, 2102212464  ;;  %v565_v55 = vsel %vm559_vm10, %v552_v50, 920167782  ;;  %v569_v60 = vsel %vm559_vm10, %v555_v51, 1326507024 }
  0xed   : > { %v481_v57 = vadd.s32 %v480_v53, %v476_v45  ;;  %v562_v58 = vsel %vm558_vm9, %v546_v30, %v561_v31  ;;  %v566_v59 = vsel %vm558_vm9, %v549_v47, %v565_v55  ;;  %v570_v63 = vsel %vm558_vm9, %v552_v50, %v569_v60 }
  0xee   : > { %v563_v61 = vsel %vm557_vm7, %v560_v35, %v562_v58  ;;  %v567_v62 = vsel %vm557_vm7, %v564_v52, %v566_v59  ;;  %v571_v1 = vsel %vm557_vm7, %v568_v56, %v570_v63  ;;  %v477_v37 = vadd.s32 %v3334_v25, %v3331_v24 }
  0xef   : > { %v482_v0 = vadd.s32 536870912, %v481_v57  ;;  %v3358_v3 = vmul.u32.u64.low %v3303_v36, %v567_v62  ;;  %v3359_v4 = vmul.u32.u64.high %v3303_v36, %v567_v62, %v3358_v3  ;;  %v579_v15 = vmul.u32 %v3303_v36, %v563_v61 }
  0xf0   : > { %v3362_v5 = vmul.u32.u64.low %v3303_v36, %v571_v1  ;;  %v3363_v12 = vmul.u32.u64.high %v3303_v36, %v571_v1, %v3362_v5  ;;  %vm513_vm5 = vweird.f32 %v3276_v9  ;;  %vm616_vm9 = vweird.f32 %v3280_v10 }
  0xf1   : > { %v483_v14 = vshrl.u32 %v482_v0, 30  ;;  %v582_v17 = vadd.s32 1, %v3359_v4 }
  0xf2   : > { %vm581_vm11 = vc.u32 %v3363_v12, %v3358_v3  ;;  %v580_v55 = vadd.s32 %v3358_v3, %v3363_v12 }
  0xf3   : > { %v484_v16 = vshll.u32 %v483_v14, 30  ;;  %v583_v48 = vsel %vm581_vm11, %v582_v17, %v3359_v4  ;;  %v507_v0 = vsub.s32 4, %v483_v14 }
  0xf4   : > { %v584_v19 = vadd.s32 %v583_v48, %v579_v15 }
  0xf5   : > { %v485_v18 = vsub.s32 %v481_v57, %v484_v16  ;;  %v508_v16 = vsel %vm423_vm14, %v507_v0, %v483_v14 }
  0xf6   : > { %v585_v21 = vadd.s32 536870912, %v584_v19  ;;  %v510_v11 = vsel %vm3374_vm15, 0, %v508_v16 }
  0xf7   : > { %v487_v20 = vsub.s32 0, %v485_v18 }
  0xf8   : > { %v586_v23 = vshrl.u32 %v585_v21, 30  ;;  %v514_v21 = vand.u32 3, %v510_v11 }
  0xf9   : > { %v2198_v22 = vmin.u32 %v487_v20, %v485_v18 }
  0xfa   : > { %v587_v28 = vshll.u32 %v586_v23, 30  ;;  %v610_v20 = vsub.s32 4, %v586_v23  ;;  %vm519_vm2 = vcmp.eq.s32.totalorder %v514_v21, 2  ;;  %vm516_vm3 = vcmp.eq.s32.totalorder %v514_v21, 0 }
  0xfb   : > { %v489_v26 = vclz %v2198_v22  ;;  %vm515_vm4 = vcmp.lt.s32.totalorder %v514_v21, 2 }
  0xfc   : > { %v588_v32 = vsub.s32 %v584_v19, %v587_v28 }
  0xfd   : > { %v2199_v30 = vadd.s32 4294967294, %v489_v26  ;;  %v611_v26 = vsel %vm526_vm0, %v610_v20, %v586_v23 }
  0xfe   : > { %v590_v39 = vsub.s32 0, %v588_v32 }
  0xff   : > { %vm2200_vm12 = vcmp.lt.s32.totalorder %v2199_v30, 0 }
 0x100   : > { %v492_v36 = vsel %vm2200_vm12, 0, %v2199_v30  ;;  %v2202_v45 = vmin.u32 %v590_v39, %v588_v32 }
 0x101   : > { %v493_v29 = vsub.s32 32, %v492_v36  ;;  %v494_v41 = vshll.u32 %v485_v18, %v492_v36  ;;  %v497_v43 = vsub.s32 4294967266, %v492_v36 }
 0x102   : > { %v592_v50 = vclz %v2202_v45 }
 0x103   : > { %v495_v47 = vshrl.u32 %v477_v37, %v493_v29  ;;  %v498_v49 = vadd.s32 127, %v497_v43  ;;  %v613_v37 = vsel %vm3386_vm1, 0, %v611_v26 }
 0x104   : > { %v2203_v52 = vadd.s32 4294967294, %v592_v50 }
 0x105   : > { %v496_v51 = vor.u32 %v495_v47, %v494_v41  ;;  %v499_v35 = vshll.u32 %v498_v49, 23  ;;  %v617_v41 = vand.u32 3, %v613_v37 }
 0x106   : > { %vm2204_vm13 = vcmp.lt.s32.totalorder %v2203_v52, 0 }
 0x107   : > { %v500_v53 = vor.u32 4788187, %v499_v35  ;;  %v503_v31 = vcvt.s32.f32 %v496_v51  ;;  %v595_v24 = vsel %vm2204_vm13, 0, %v2203_v52  ;;  %vm622_vm6 = vcmp.eq.s32.totalorder %v617_v41, 2 }
 0x108   : > { %v596_v25 = vsub.s32 32, %v595_v24  ;;  %v597_v57 = vshll.u32 %v588_v32, %v595_v24  ;;  %v600_v58 = vsub.s32 4294967266, %v595_v24  ;;  %vm619_vm7 = vcmp.eq.s32.totalorder %v617_v41, 0 }
 0x109   : > { %v501_v56 = vand.u32 2147483647, %v500_v53  ;;  %vm618_vm8 = vcmp.lt.s32.totalorder %v617_v41, 2 }
 0x10a   : > { %v598_v60 = vshrl.u32 %v580_v55, %v596_v25  ;;  %v601_v61 = vadd.s32 127, %v600_v58 }
 0x10b   : > { %v504_v59 = vmul.f32 %v503_v31, %v501_v56 }
 0x10c   : > { %v599_v1 = vor.u32 %v598_v60, %v597_v57  ;;  %v602_v3 = vshll.u32 %v601_v61, 23 }
 0x10d   : > { %v505_v63 = vxor.u32 2147483648, %v504_v59 }
 0x10e   : > { %v603_v12 = vor.u32 4788187, %v602_v3  ;;  %v606_v15 = vcvt.s32.f32 %v599_v1 }
 0x10f   : > { %v506_v4 = vsel %vm423_vm14, %v505_v63, %v504_v59 }
 0x110   : > { %v509_v5 = vsel %vm3374_vm15, %v3276_v9, %v506_v4  ;;  %v604_v17 = vand.u32 2147483647, %v603_v12 }
 0x111   : > { %2582 = vcosq.f32 %v509_v5 }
 0x112   : > { %2584 = vsinq.f32 %v509_v5  ;;  %v607_v18 = vmul.f32 %v606_v15, %v604_v17 }
 0x114   : > { %v608_v19 = vxor.u32 2147483648, %v607_v18 }
 0x116   : > { %v609_v22 = vsel %vm526_vm0, %v608_v19, %v607_v18 }
 0x117   : > { %v612_v14 = vsel %vm3386_vm1, %v3280_v10, %v609_v22 }
 0x118   : > { %2586 = vcosq.f32 %v612_v14 }
 0x119   : > { %2588 = vsinq.f32 %v612_v14 }
 0x11b   : > { %v2583_v28 = vpop.eup %2582 }
 0x11c   : > { %v2585_v30 = vpop.eup %2584  ;;  %v520_v32 = vxor.u32 2147483648, %v2583_v28 }
 0x11d   : > { %v517_v13 = vxor.u32 2147483648, %v2585_v30 }
 0x11e   : > { %v521_v36 = vsel %vm519_vm2, %v520_v32, %v2585_v30 }
 0x11f   : > { %v518_v39 = vsel %vm516_vm3, %v2583_v28, %v517_v13 }
 0x120   : > { %v522_v29 = vsel %vm515_vm4, %v518_v39, %v521_v36 }
 0x121   : > { %v523_v43 = vsel %vm513_vm5, nan, %v522_v29 }
 0x122   : > { %v627_v23 = vmul.f32 %v523_v43, %v3291_v27  ;;  %v2587_v45 = vpop.eup %2586 }
 0x123   : > { %v2589_v49 = vpop.eup %2588  ;;  %v623_v50 = vxor.u32 2147483648, %v2587_v45 }
 0x124   : > { %v629_v47 = vsub.f32 %v3297_v33, %v627_v23  ;;  %v620_v51 = vxor.u32 2147483648, %v2589_v49 }
 0x125   : > { %v624_v9 = vsel %vm622_vm6, %v623_v50, %v2589_v49 }
 0x126   : > { %631 = vst [vmem:[#allocation2 + $0x8] sm:$0xff] %v629_v47  ;;  %v621_v35 = vsel %vm619_vm7, %v2587_v45, %v620_v51 }
 0x127   : > { %v625_v52 = vsel %vm618_vm8, %v621_v35, %v624_v9 }
 0x128   : > { %v626_v53 = vsel %vm616_vm9, nan, %v625_v52 }
 0x129   : > { %v628_v31 = vmul.f32 %v626_v53, %v3291_v27 }
 0x12b   : > { %v630_v55 = vsub.f32 %v3301_v34, %v628_v31 }
 0x12d   : > { %632 = vst [vmem:[#allocation2 + $0x10] sm:$0xff] %v630_v55 }
 0x12e   : > { %2887 = dma.done.wait [#allocation3], 128 }
 0x12f   : > { %2888 = vsyncadd [#allocation3], 4294967168 }
 0x130   : > { %2889 = dma.done.wait [#allocation3 + $0x1], 128 }
 0x131   : > { %2890 = vsyncadd [#allocation3 + $0x1], 4294967168  ;;  %v2590_v33 = vld [vmem:[#allocation7 + $0x40] sm:$0xff]   ;;  %v2594_v25 = vld [vmem:[#allocation7 + $0x48] sm:$0xff]   ;;  %v2957_v36 = vmov 0.0   ;;  %vm881_vm10 = vcmask 1044480  }
 0x132   : > { %v2591_v56 = vld [vmem:[#allocation7] sm:$0xff]   ;;  %2299 = vmatprep.subr.bf16.mxu0 %v2590_v33  ;;  %v2595_v57 = vld [vmem:[#allocation7 + $0x8] sm:$0xff]   ;;  %v2598_v59 = vld [vmem:[#allocation7 + $0x50] sm:$0xff]   ;;  %vm1049_vm12 = vsmask.f32 5376  ;;  %s3832_s23 = sld [smem:[#allocation32_spill]] }
 0x133   : > { %v2592_v24 = vld [vmem:[#allocation7 + $0xc0] sm:$0xff]   ;;  %2300 = vmatpush3.bf16.msra.mxu0 %v2591_v56  ;;  %v2596_v58 = vld [vmem:[#allocation7 + $0xc8] sm:$0xff]   ;;  %v2599_v60 = vld [vmem:[#allocation7 + $0x10] sm:$0xff]   ;;  %s3833_s26 = sld [smem:[#allocation33_spill]]  ;;  %s2288_s25 = sshll.u32 %s2924_s11, 1 }
 0x134   : > { %v2593_v10 = vld [vmem:[#allocation7 + $0x80] sm:$0xff]   ;;  %2321 = vmatprep.subr.bf16.mxu1 %v2592_v24  ;;  %2301 = vmatprep.subr.bf16.mxu0 %v2594_v25  ;;  %v2597_v34 = vld [vmem:[#allocation7 + $0x88] sm:$0xff]   ;;  %v2600_v61 = vld [vmem:[#allocation7 + $0xd0] sm:$0xff]   ;;  %s2289_s24 = sshll.u32 %s2928_s12, 3  ;;  %s3836_s7 = sld [smem:[#allocation35_spill]] }
 0x135   : > { %2322 = vmatpush3.bf16.msra.mxu1 %v2593_v10  ;;  %v2601_v62 = vld [vmem:[#allocation7 + $0x90] sm:$0xff]   ;;  %v2602_v63 = vld [vmem:[#allocation7 + $0x58] sm:$0xff]   ;;  %v2606_v4 = vld [vmem:[#allocation7 + $0x60] sm:$0xff]   ;;  %s2037_s6 = sadd.s32 %s2289_s24, %s2288_s25  ;;  %s2040_s13 = sshll.u32 %s3402_s21, 4  ;;  %s3701_s13 = int_to_ptr.vmem [resolvable:$true] %s2040_s13 }
 0x136   : > { %2323 = vmatprep.subr.bf16.mxu1 %v2596_v58  ;;  %v2603_v0 = vld [vmem:[#allocation7 + $0x18] sm:$0xff]   ;;  %v2607_v5 = vld [vmem:[#allocation7 + $0x20] sm:$0xff]   ;;  %v2610_v16 = vld [vmem:[#allocation7 + $0x68] sm:$0xff]   ;;  %s2290_s22 = sshll.u32 %s2037_s6, 7  ;;  %s3837_s20 = sld [smem:[#allocation36_spill]] }
 0x137   : > { %2302 = vmatpush3.bf16.msra.mxu0 %v2595_v57  ;;  %v2604_v1 = vld [vmem:[#allocation7 + $0xd8] sm:$0xff]   ;;  %v2608_v12 = vld [vmem:[#allocation7 + $0xe0] sm:$0xff]   ;;  %v2611_v17 = vld [vmem:[#allocation7 + $0x28] sm:$0xff]   ;;  %s3838_s30 = sand.u32 1, %s2904_s28   ;;  %s2807_s17 = scalar_lea.vmem %s3701_s13, 256 }
 0x138   : > { %2303 = vmatprep.subr.bf16.mxu0 %v2598_v59  ;;  %v2605_v3 = vld [vmem:[#allocation7 + $0x98] sm:$0xff]   ;;  %v2609_v15 = vld [vmem:[#allocation7 + $0xa0] sm:$0xff]   ;;  %v2612_v11 = vld [vmem:[#allocation7 + $0xe8] sm:$0xff]   ;;  %s3713_s3 = scalar_lea.sflag [#allocation6], %s3838_s30  ;;  %p2808_p8 = scmp.ne.s32.totalorder %s3701_s13, %s2807_s17 }
 0x139   : > { %2324 = vmatpush3.bf16.msra.mxu1 %v2597_v34  ;;  %v2613_v18 = vld [vmem:[#allocation7 + $0xa8] sm:$0xff]   ;;  %v2614_v48 = vld [vmem:[#allocation7 + $0x70] sm:$0xff]   ;;  %v2618_v22 = vld [vmem:[#allocation7 + $0x78] sm:$0xff]   ;;  %p3839_p4 = scmp.ne.s32.totalorder %s3813_s4, 0  ;;  %s2959_s2 = smov [#allocation10]  }
 0x13a   : > { %2325 = vmatprep.subr.bf16.mxu1 %v2600_v61  ;;  %v2615_v19 = vld [vmem:[#allocation7 + $0x30] sm:$0xff]   ;;  %v2619_v14 = vld [vmem:[#allocation7 + $0x38] sm:$0xff]   ;;  %v3404_v30 = vld [vmem:[#allocation2] sm:$0xff]  ;;  %s2811_s16 = sshll.u32 %s2959_s2, 4  ;;  %s2812_s16 = int_to_ptr.vmem [resolvable:$false] %s2811_s16 }
 0x13b   : > { %2304 = vmatpush3.bf16.msra.mxu0 %v2599_v60  ;;  %v2616_v20 = vld [vmem:[#allocation7 + $0xf0] sm:$0xff]   ;;  %v2620_v26 = vld [vmem:[#allocation7 + $0xf8] sm:$0xff]   ;;  %v3408_v32 = vmul.f32 %v3404_v30, %v3262_v8  ;;  %v3410_v13 = vld [vmem:[#allocation2 + $0x8] sm:$0xff]  ;;  %p2809_p3 = pnand %p2808_p8, %p3839_p4  ;;  %s2813_s27 = scalar_lea.vmem %s2812_s16, 512 }
 0x13c   : > { %2305 = vmatprep.subr.bf16.mxu0 %v2602_v63  ;;  %v2617_v21 = vld [vmem:[#allocation7 + $0xb0] sm:$0xff]   ;;  %v2621_v28 = vld [vmem:[#allocation7 + $0xb8] sm:$0xff]   ;;  %v2622_v37 = vld [vmem:[#allocation7 + $0x140] sm:$0xff]   ;;  %v882_v41 = vrot.slane %v3410_v13, 3  ;;  %s3708_s18 = scalar_lea.hbm %s3837_s20, %s2290_s22  ;;  %p2814_p11 = scmp.lt.s32.totalorder %s3701_s13, %s2812_s16 }
 0x13d   : > { %2326 = vmatpush3.bf16.msra.mxu1 %v2601_v62  ;;  %v644_v39 = vand.u32 2139095040, %v3408_v32  ;;  %v3414_v29 = vld [vmem:[#allocation2 + $0x10] sm:$0xff]  ;;  %v641_v43 = vand.u32 2147483647, %v3408_v32  ;;  %vm643_vm9 = vcmp.lt.s32.totalorder %v3408_v32, 0  ;;  %p2810_p9 = pneg %p2809_p3  ;;  %p2815_p6 = scmp.lt.s32.totalorder %s2813_s27, %s2807_s17 }
 0x13e   : > { %2327 = vmatprep.subr.bf16.mxu1 %v2604_v1  ;;  %v883_v45 = vrot.slane %v3414_v29, 3 }
 0x13f   : > { %2306 = vmatpush3.bf16.msra.mxu0 %v2603_v0  ;;  %v645_v23 = vshrl.u32 %v644_v39, 23  ;;  %v648_v51 = vand.u32 8388607, %v641_v43  ;;  %p2816_p7 = por %p2815_p6, %p2814_p11 }
 0x140   : > { %2307 = vmatprep.subr.bf16.mxu0 %v2606_v4  ;;  %v884_v49 = vsel %vm881_vm10, %v882_v41, %v883_v45  ;;  %v926_v50 = vpack.c.bf16 %v883_v45, %v883_v45  ;;  %vm642_vm10 = vcmp.le.f32.partialorder %v641_v43, 0.7853982 }
 0x141   : > { %2328 = vmatpush3.bf16.msra.mxu1 %v2605_v3  ;;  %v2205_v47 = vadd.s32 4294967169, %v645_v23  ;;  %v919_v9 = vpack.c.bf16 %v884_v49, %v882_v41  ;;  %v649_v24 = vor.u32 8388608, %v648_v51  ;;  %p2817_p12 = pnand %p2816_p7, %p2810_p9 }
 0x142   : > { %2329 = vmatprep.subr.bf16.mxu1 %v2608_v12  ;;  %v1110_v52 = vshrl.u32 %v926_v50, 16  ;;  %v1113_v53 = vshll.u32 %v926_v50, 16 }
 0x143   : > { %2308 = vmatpush3.bf16.msra.mxu0 %v2607_v5  ;;  %v651_v35 = vadd.s32 1, %v2205_v47  ;;  %v1102_v31 = vshrl.u32 %v919_v9, 16  ;;  %v1105_v55 = vshll.u32 %v919_v9, 16  ;;  %v689_v4 = vshll.u32 %v649_v24, 8 }
 0x144   : > { %2309 = vmatprep.subr.bf16.mxu0 %v2610_v16  ;;  %v1112_v33 = vrot.slane %v1110_v52, 2  ;;  %v1115_v56 = vrot.slane %v1113_v53, 3 }
 0x145   : > { %2330 = vmatpush3.bf16.msra.mxu1 %v2609_v15  ;;  %vm652_vm11 = vcmp.gt.s32.totalorder %v651_v35, 0  ;;  %v1104_v25 = vrot.slane %v1102_v31, 2  ;;  %v1107_v57 = vrot.slane %v1105_v55, 3 }
 0x146   : > { %2331 = vmatprep.subr.bf16.mxu1 %v2612_v11  ;;  %v653_v10 = vsel %vm652_vm11, %v651_v35, 0  ;;  %v1116_v60 = vor.u32 %v1115_v56, %v1112_v33  ;;  %v3444_v33 = vld [vmem:[#allocation2 + $0x18] sm:$0xff] }
 0x147   : > { %2310 = vmatpush3.bf16.msra.mxu0 %v2611_v17  ;;  %v655_v58 = vand.u32 31, %v653_v10  ;;  %v654_v34 = vshrl.u32 %v653_v10, 5  ;;  %v1108_v59 = vor.u32 %v1107_v57, %v1104_v25  ;;  %v3449_v24 = vmul.f32 %v3444_v33, %v3262_v8 }
 0x148   : > { %2311 = vmatprep.subr.bf16.mxu0 %v2614_v48 }
 0x149   : > { %2332 = vmatpush3.bf16.msra.mxu1 %v2613_v18  ;;  %v656_v61 = vsub.s32 32, %v655_v58  ;;  %v658_v62 = vshll.u32 %v2951_v38, %v655_v58  ;;  %v661_v63 = vshll.u32 %v2952_v40, %v655_v58  ;;  %v664_v0 = vshll.u32 %v2953_v42, %v655_v58 }
 0x14a   : > { %2333 = vmatprep.subr.bf16.mxu1 %v2616_v20  ;;  %v667_v1 = vshll.u32 %v2954_v44, %v655_v58  ;;  %v670_v3 = vshll.u32 %v2955_v46, %v655_v58  ;;  %vm673_vm13 = vcmp.lt.s32.totalorder %v654_v34, 1  ;;  %vm676_vm14 = vcmp.lt.s32.totalorder %v654_v34, 4 }
 0x14b   : > { %2312 = vmatpush3.bf16.msra.mxu0 %v2615_v19  ;;  %v657_v5 = vshrl.u32 %v2951_v38, %v656_v61  ;;  %v659_v12 = vshrl.u32 %v2952_v40, %v656_v61  ;;  %v662_v15 = vshrl.u32 %v2953_v42, %v656_v61  ;;  %v665_v16 = vshrl.u32 %v2954_v44, %v656_v61 }
 0x14c   : > { %2313 = vmatprep.subr.bf16.mxu0 %v2618_v22  ;;  %v668_v17 = vshrl.u32 %v2955_v46, %v656_v61  ;;  %v671_v11 = vshrl.u32 %v2956_v54, %v656_v61  ;;  %v1117_v20 = vsel %vm1049_vm12, %v1108_v59, %v1116_v60  ;;  %vm674_vm15 = vcmp.lt.s32.totalorder %v654_v34, 2 }
 0x14d   : > { %2334 = vmatpush3.bf16.msra.mxu1 %v2617_v21  ;;  %v660_v18 = vor.u32 %v659_v12, %v658_v62  ;;  %v663_v48 = vor.u32 %v662_v15, %v661_v63  ;;  %v666_v19 = vor.u32 %v665_v16, %v664_v0  ;;  %vm675_vm0 = vcmp.lt.s32.totalorder %v654_v34, 3  ;;  %1585 = vmatprep.mubr.bf16.mxu1 %v1117_v20 }
 0x14e   : > { %2335 = vmatprep.subr.bf16.mxu1 %v2620_v26  ;;  %v669_v21 = vor.u32 %v668_v17, %v667_v1  ;;  %v672_v22 = vor.u32 %v671_v11, %v670_v3  ;;  %v750_v25 = vand.u32 2147483647, %v3449_v24  ;;  %v753_v57 = vand.u32 2139095040, %v3449_v24 }
 0x14f   : > { %2314 = vmatpush3.bf16.msra.mxu0 %v2619_v14  ;;  %v677_v14 = vsel %vm673_vm13, %v657_v5, %v660_v18  ;;  %v678_v26 = vsel %vm676_vm14, %v666_v19, 2102212464 }
 0x150   : > { %2343 = vmatprep.subr.bf16.mxu0 %v2622_v37  ;;  %v685_v37 = vsel %vm673_vm13, %v663_v48, %v666_v19  ;;  %v679_v39 = vsel %vm675_vm0, %v663_v48, %v678_v26  ;;  %v682_v41 = vsel %vm676_vm14, %v669_v21, 920167782  ;;  %v686_v23 = vsel %vm676_vm14, %v672_v22, 1326507024 }
 0x151   : > { %2336 = vmatpush3.bf16.msra.mxu1 %v2621_v28  ;;  %v681_v28 = vsel %vm673_vm13, %v660_v18, %v663_v48  ;;  %v683_v45 = vsel %vm675_vm0, %v666_v19, %v682_v41  ;;  %v687_v47 = vsel %vm675_vm0, %v669_v21, %v686_v23  ;;  %v680_v49 = vsel %vm674_vm15, %v677_v14, %v679_v39 }
 0x152   : > { %2383 = vmatprep.subr.bf16.mxu1 %v2957_v36  ;;  %v684_v50 = vsel %vm674_vm15, %v681_v28, %v683_v45  ;;  %v688_v51 = vsel %vm674_vm15, %v685_v37, %v687_v47  ;;  %v696_v31 = vmul.u32 %v689_v4, %v680_v49  ;;  %v754_v34 = vshrl.u32 %v753_v57, 23 }
 0x153   : > { %v3436_v9 = vmul.u32.u64.low %v689_v4, %v688_v51  ;;  %v3437_v35 = vmul.u32.u64.high %v689_v4, %v688_v51, %v3436_v9  ;;  %v3439_v52 = vmul.u32.u64.low %v689_v4, %v684_v50  ;;  %v3440_v53 = vmul.u32.u64.high %v689_v4, %v684_v50, %v3439_v52 }
 0x154   : > { %v2209_v60 = vadd.s32 4294967169, %v754_v34  ;;  %v757_v61 = vand.u32 8388607, %v750_v25  ;;  %vm863_vm13 = vcmask 1046528   ;;  %vm733_vm0 = vweird.f32 %v3408_v32 }
 0x155   : > { %vm698_vm1 = vc.u32 %v3437_v35, %v3439_v52  ;;  %v699_v55 = vadd.s32 1, %v3440_v53  ;;  %v697_v5 = vadd.s32 %v3439_v52, %v3437_v35 }
 0x156   : > { %v760_v63 = vadd.s32 1, %v2209_v60  ;;  %v758_v1 = vor.u32 8388608, %v757_v61 }
 0x157   : > { %v700_v56 = vsel %vm698_vm1, %v699_v55, %v3440_v53 }
 0x158   : > { %v701_v10 = vadd.s32 %v700_v56, %v696_v31  ;;  %vm761_vm2 = vcmp.gt.s32.totalorder %v760_v63, 0  ;;  %v798_v21 = vshll.u32 %v758_v1, 8 }
 0x159   : > { %v762_v3 = vsel %vm761_vm2, %v760_v63, 0  ;;  %vm872_vm2 = vcmask 1045504  }
 0x15a   : > { %v702_v58 = vadd.s32 536870912, %v701_v10  ;;  %v764_v4 = vand.u32 31, %v762_v3  ;;  %v763_v15 = vshrl.u32 %v762_v3, 5 }
 0x15c   : > { %v3453_v59 = vshrl.u32 %v702_v58, 30  ;;  %v765_v16 = vsub.s32 32, %v764_v4  ;;  %v767_v17 = vshll.u32 %v2951_v38, %v764_v4  ;;  %v770_v11 = vshll.u32 %v2952_v40, %v764_v4 }
 0x15d   : > { %v773_v18 = vshll.u32 %v2953_v42, %v764_v4  ;;  %v776_v19 = vshll.u32 %v2954_v44, %v764_v4  ;;  %v779_v20 = vshll.u32 %v2955_v46, %v764_v4  ;;  %vm782_vm3 = vcmp.lt.s32.totalorder %v763_v15, 1 }
 0x15e   : > { %v704_v62 = vshll.u32 %v3453_v59, 30  ;;  %v766_v22 = vshrl.u32 %v2951_v38, %v765_v16  ;;  %v768_v14 = vshrl.u32 %v2952_v40, %v765_v16  ;;  %v771_v26 = vshrl.u32 %v2953_v42, %v765_v16 }
 0x15f   : > { %v774_v28 = vshrl.u32 %v2954_v44, %v765_v16  ;;  %v777_v39 = vshrl.u32 %v2955_v46, %v765_v16  ;;  %v780_v41 = vshrl.u32 %v2956_v54, %v765_v16  ;;  %vm783_vm4 = vcmp.lt.s32.totalorder %v763_v15, 2 }
 0x160   : > { %v705_v0 = vsub.s32 %v701_v10, %v704_v62  ;;  %v769_v23 = vor.u32 %v768_v14, %v767_v17  ;;  %v772_v45 = vor.u32 %v771_v26, %v770_v11  ;;  %vm785_vm6 = vcmp.lt.s32.totalorder %v763_v15, 4 }
 0x161   : > { %v775_v47 = vor.u32 %v774_v28, %v773_v18  ;;  %v778_v49 = vor.u32 %v777_v39, %v776_v19  ;;  %v781_v50 = vor.u32 %v780_v41, %v779_v20  ;;  %vm784_vm7 = vcmp.lt.s32.totalorder %v763_v15, 3 }
 0x162   : > { %v707_v8 = vsub.s32 0, %v705_v0  ;;  %v786_v9 = vsel %vm782_vm3, %v766_v22, %v769_v23  ;;  %v790_v55 = vsel %vm782_vm3, %v769_v23, %v772_v45  ;;  %v727_v14 = vsub.s32 4, %v3453_v59 }
 0x163   : > { %v787_v35 = vsel %vm785_vm6, %v775_v47, 2102212464  ;;  %v791_v10 = vsel %vm785_vm6, %v778_v49, 920167782  ;;  %v794_v57 = vsel %vm782_vm3, %v772_v45, %v775_v47  ;;  %v795_v58 = vsel %vm785_vm6, %v781_v50, 1326507024 }
 0x164   : > { %v2206_v12 = vmin.u32 %v707_v8, %v705_v0  ;;  %v788_v56 = vsel %vm784_vm7, %v772_v45, %v787_v35  ;;  %v792_v61 = vsel %vm784_vm7, %v775_v47, %v791_v10  ;;  %v796_v62 = vsel %vm784_vm7, %v778_v49, %v795_v58 }
 0x165   : > { %v793_v63 = vsel %vm783_vm4, %v790_v55, %v792_v61  ;;  %v797_v8 = vsel %vm783_vm4, %v794_v57, %v796_v62  ;;  %v728_v39 = vsel %vm643_vm9, %v727_v14, %v3453_v59  ;;  %v867_v50 = vrot.slane %v3414_v29, 1 }
 0x166   : > { %v709_v48 = vclz %v2206_v12  ;;  %v789_v12 = vsel %vm783_vm4, %v786_v9, %v788_v56  ;;  %v3479_v16 = vmul.u32.u64.low %v798_v21, %v793_v63  ;;  %v3480_v17 = vmul.u32.u64.high %v798_v21, %v793_v63, %v3479_v16 }
 0x167   : > { %v730_v45 = vsel %vm642_vm10, 0, %v728_v39  ;;  %v923_v9 = vpack.c.bf16 %v3414_v29, %v3414_v29  ;;  %v876_v59 = vrot.slane %v3414_v29, 2  ;;  %v924_v56 = vpack.c.bf16 %v867_v50, %v867_v50 }
 0x168   : > { %v2207_v37 = vadd.s32 4294967294, %v709_v48  ;;  %v805_v48 = vmul.u32 %v798_v21, %v789_v12  ;;  %v808_v19 = vadd.s32 1, %v3480_v17  ;;  %v734_v49 = vand.u32 3, %v730_v45 }
 0x169   : > { %v865_v57 = vrot.slane %v3410_v13, 1  ;;  %v1062_v61 = vshll.u32 %v923_v9, 16  ;;  %v925_v63 = vpack.c.bf16 %v876_v59, %v876_v59  ;;  %vm752_vm3 = vcmp.lt.s32.totalorder %v3449_v24, 0 }
 0x16a   : > { %vm2208_vm5 = vcmp.lt.s32.totalorder %v2207_v37, 0  ;;  %vm739_vm11 = vcmp.eq.s32.totalorder %v734_v49, 2  ;;  %vm736_vm14 = vcmp.eq.s32.totalorder %v734_v49, 0  ;;  %vm735_vm15 = vcmp.lt.s32.totalorder %v734_v49, 2 }
 0x16b   : > { %v712_v51 = vsel %vm2208_vm5, 0, %v2207_v37  ;;  %v1064_v14 = vrot.slane %v1062_v61, 3  ;;  %vm3514_vm4 = vcmp.le.f32.partialorder %v750_v25, 0.7853982  ;;  %vm2958_vm5 = vmmov 0  }
 0x16c   : > { %v713_v52 = vsub.s32 32, %v712_v51  ;;  %v714_v53 = vshll.u32 %v705_v0, %v712_v51  ;;  %v717_v31 = vsub.s32 4294967266, %v712_v51  ;;  %vm898_vm6 = vcmask 1042432  }
 0x16d   : > { %v3475_v4 = vmul.u32.u64.low %v798_v21, %v797_v8  ;;  %v3476_v0 = vmul.u32.u64.high %v798_v21, %v797_v8, %v3475_v4  ;;  %vm889_vm7 = vcmask 1043456  }
 0x16e   : > { %v715_v34 = vshrl.u32 %v697_v5, %v713_v52  ;;  %v718_v60 = vadd.s32 127, %v717_v31  ;;  %v639_v31 = vadd.f32 %v3404_v30, %v3291_v27  ;;  %v1076_v30 = vshrl.u32 %v924_v56, 16 }
 0x16f   : > { %vm807_vm8 = vc.u32 %v3476_v0, %v3479_v16  ;;  %v806_v8 = vadd.s32 %v3479_v16, %v3476_v0  ;;  %v868_v0 = vsel %vm863_vm13, %v865_v57, %v867_v50 }
 0x170   : > { %v716_v1 = vor.u32 %v715_v34, %v714_v53  ;;  %v719_v3 = vshll.u32 %v718_v60, 23  ;;  %v809_v22 = vsel %vm807_vm8, %v808_v19, %v3480_v17  ;;  %v1059_v60 = vshrl.u32 %v923_v9, 16 }
 0x171   : > { %v810_v26 = vadd.s32 %v809_v22, %v805_v48  ;;  %v1093_v48 = vshrl.u32 %v925_v63, 16  ;;  %v1096_v19 = vshll.u32 %v925_v63, 16 }
 0x172   : > { %v720_v11 = vor.u32 4788187, %v719_v3  ;;  %v723_v18 = vcvt.s32.f32 %v716_v1  ;;  %v1079_v3 = vshll.u32 %v924_v56, 16  ;;  %v1061_v16 = vrot.slane %v1059_v60, 2 }
 0x173   : > { %v811_v37 = vadd.s32 536870912, %v810_v26  ;;  %v1095_v49 = vrot.slane %v1093_v48, 2 }
 0x174   : > { %v721_v5 = vand.u32 2147483647, %v720_v11  ;;  %v1065_v60 = vor.u32 %v1064_v14, %v1061_v16  ;;  %v2625_v16 = vld [vmem:[#allocation7 + $0x148] sm:$0xff]  }
 0x175   : > { %v3491_v41 = vshrl.u32 %v811_v37, 30 }
 0x176   : > { %v724_v20 = vmul.f32 %v723_v18, %v721_v5 }
 0x177   : > { %v813_v23 = vshll.u32 %v3491_v41, 30 }
 0x178   : > { %v725_v15 = vxor.u32 2147483648, %v724_v20 }
 0x179   : > { %v814_v47 = vsub.s32 %v810_v26, %v813_v23  ;;  %v1078_v26 = vrot.slane %v1076_v30, 2 }
 0x17a   : > { %v726_v28 = vsel %vm643_vm9, %v725_v15, %v724_v20  ;;  %vm907_vm9 = vcmask 1041408  }
 0x17b   : > { %v729_v21 = vsel %vm642_vm10, %v3408_v32, %v726_v28  ;;  %v816_v43 = vsub.s32 0, %v814_v47  ;;  %v874_v32 = vrot.slane %v3410_v13, 2  ;;  %v1081_v28 = vrot.slane %v1079_v3, 3 }
 0x17c   : > { %2654 = vcosq.f32 %v729_v21 }
 0x17d   : > { %2656 = vsinq.f32 %v729_v21  ;;  %v2210_v51 = vmin.u32 %v816_v43, %v814_v47  ;;  %v1098_v43 = vrot.slane %v1096_v19, 3  ;;  %v2624_v19 = vld [vmem:[#allocation7 + $0x180] sm:$0xff]  }
 0x17f   : > { %v818_v52 = vclz %v2210_v51 }
 0x181   : > { %v2211_v58 = vadd.s32 4294967294, %v818_v52 }
 0x183   : > { %vm2212_vm1 = vcmp.lt.s32.totalorder %v2211_v58, 0 }
 0x184   : > { %v821_v4 = vsel %vm2212_vm1, 0, %v2211_v58 }
 0x185   : > { %v822_v17 = vsub.s32 32, %v821_v4  ;;  %v823_v11 = vshll.u32 %v814_v47, %v821_v4  ;;  %v826_v18 = vsub.s32 4294967266, %v821_v4  ;;  %v877_v47 = vsel %vm872_vm2, %v874_v32, %v876_v59 }
 0x186   : > { %v2655_v35 = vpop.eup %2654 }
 0x187   : > { %v2657_v53 = vpop.eup %2656  ;;  %v740_v55 = vxor.u32 2147483648, %v2655_v35  ;;  %v824_v20 = vshrl.u32 %v806_v8, %v822_v17  ;;  %v827_v22 = vadd.s32 127, %v826_v18 }
 0x188   : > { %v737_v10 = vxor.u32 2147483648, %v2657_v53 }
 0x189   : > { %v741_v34 = vsel %vm739_vm11, %v740_v55, %v2657_v53  ;;  %v825_v37 = vor.u32 %v824_v20, %v823_v11  ;;  %v828_v21 = vshll.u32 %v827_v22, 23  ;;  %v2623_v20 = vld [vmem:[#allocation7 + $0x100] sm:$0xff]  }
 0x18a   : > { %v738_v62 = vsel %vm736_vm14, %v2655_v35, %v737_v10  ;;  %v1082_v10 = vor.u32 %v1081_v28, %v1078_v26  ;;  %v2627_v26 = vld [vmem:[#allocation7 + $0x188] sm:$0xff]  }
 0x18b   : > { %v742_v1 = vsel %vm735_vm15, %v738_v62, %v741_v34  ;;  %v829_v51 = vor.u32 4788187, %v828_v21  ;;  %v832_v9 = vcvt.s32.f32 %v825_v37  ;;  %v2626_v28 = vld [vmem:[#allocation7 + $0x108] sm:$0xff]   ;;  %v2628_v37 = vld [vmem:[#allocation7 + $0x150] sm:$0xff]  }
 0x18c   : > { %v743_v12 = vsel %vm733_vm0, nan, %v742_v1  ;;  %v1099_v1 = vor.u32 %v1098_v43, %v1095_v49  ;;  %v900_v49 = vrot.slane %v3414_v29, 5  ;;  %v890_v43 = vrot.slane %v3410_v13, 4 }
 0x18d   : > { %v744_v5 = vmul.f32 %v743_v12, %v3291_v27  ;;  %v830_v56 = vand.u32 2147483647, %v829_v51  ;;  %v891_v51 = vrot.slane %v3414_v29, 4 }
 0x18f   : > { %v745_v15 = vsub.f32 %v639_v31, %v744_v5  ;;  %v836_v5 = vsub.s32 4, %v3491_v41 }
 0x191   : > { %746 = vst [vmem:[#allocation2] sm:$0xff] %v745_v15  ;;  %v864_v39 = vrot.slane %v745_v15, 1  ;;  %v916_v23 = vpack.c.bf16 %v3410_v13, %v745_v15  ;;  %v873_v45 = vrot.slane %v745_v15, 2  ;;  %v837_v14 = vsel %vm752_vm3, %v836_v5, %v3491_v41  ;;  %v2630_v41 = vld [vmem:[#allocation7 + $0x190] sm:$0xff]  }
 0x192   : > { %v839_v21 = vsel %vm3514_vm4, 0, %v837_v14 }
 0x193   : > { %v866_v35 = vsel %vm863_vm13, %v864_v39, %v865_v57  ;;  %v1051_v50 = vshrl.u32 %v916_v23, 16  ;;  %v1054_v52 = vshll.u32 %v916_v23, 16  ;;  %v875_v53 = vsel %vm872_vm2, %v873_v45, %v874_v32  ;;  %v2629_v39 = vld [vmem:[#allocation7 + $0x110] sm:$0xff]   ;;  %v2631_v45 = vld [vmem:[#allocation7 + $0x158] sm:$0xff]  }
 0x194   : > { %v917_v31 = vpack.c.bf16 %v868_v0, %v866_v35  ;;  %v918_v55 = vpack.c.bf16 %v877_v47, %v875_v53  ;;  %v833_v57 = vmul.f32 %v832_v9, %v830_v56  ;;  %v843_v23 = vand.u32 3, %v839_v21  ;;  %v2633_v9 = vld [vmem:[#allocation7 + $0x198] sm:$0xff]  }
 0x195   : > { %v1053_v58 = vrot.slane %v1051_v50, 2  ;;  %v1056_v34 = vrot.slane %v1054_v52, 3  ;;  %v899_v47 = vrot.slane %v3410_v13, 5  ;;  %v908_v35 = vrot.slane %v3410_v13, 6  ;;  %v2632_v53 = vld [vmem:[#allocation7 + $0x118] sm:$0xff]  }
 0x196   : > { %v1068_v61 = vshrl.u32 %v917_v31, 16  ;;  %v1071_v62 = vshll.u32 %v917_v31, 16  ;;  %v1085_v59 = vshrl.u32 %v918_v55, 16  ;;  %v1088_v63 = vshll.u32 %v918_v55, 16  ;;  %v2634_v55 = vld [vmem:[#allocation7 + $0x160] sm:$0xff]  }
 0x197   : > { %v1057_v8 = vor.u32 %v1056_v34, %v1053_v58  ;;  %v834_v18 = vxor.u32 2147483648, %v833_v57  ;;  %v909_v50 = vrot.slane %v3414_v29, 6  ;;  %vm848_vm8 = vcmp.eq.s32.totalorder %v843_v23, 2  ;;  %v2636_v34 = vld [vmem:[#allocation7 + $0x1a0] sm:$0xff]  }
 0x198   : > { %v1070_v30 = vrot.slane %v1068_v61, 2  ;;  %v1073_v3 = vrot.slane %v1071_v62, 3  ;;  %v1087_v4 = vrot.slane %v1085_v59, 2  ;;  %v1090_v12 = vrot.slane %v1088_v63, 3  ;;  %v2635_v62 = vld [vmem:[#allocation7 + $0x120] sm:$0xff]  }
 0x199   : > { %v1066_v17 = vsel %vm1049_vm12, %v1057_v8, %v1065_v60  ;;  %v835_v22 = vsel %vm752_vm3, %v834_v18, %v833_v57  ;;  %vm845_vm10 = vcmp.eq.s32.totalorder %v843_v23, 0  ;;  %v892_v13 = vsel %vm889_vm7, %v890_v43, %v891_v51 }
 0x19a   : > { %v1074_v32 = vor.u32 %v1073_v3, %v1070_v30  ;;  %v1091_v48 = vor.u32 %v1090_v12, %v1087_v4  ;;  %v838_v25 = vsel %vm3514_vm4, %v3449_v24, %v835_v22  ;;  %vm844_vm11 = vcmp.lt.s32.totalorder %v843_v23, 2  ;;  %v2639_v4 = vld [vmem:[#allocation7 + $0x1a8] sm:$0xff]  }
 0x19b   : > { %2658 = vcosq.f32 %v838_v25  ;;  %vm842_vm13 = vweird.f32 %v3449_v24  ;;  %v910_v61 = vsel %vm907_vm9, %v908_v35, %v909_v50  ;;  %v920_v8 = vpack.c.bf16 %v892_v13, %v890_v43  ;;  %v2645_v43 = vld [vmem:[#allocation7 + $0x1b8] sm:$0xff]  }
 0x19c   : > { %v1083_v15 = vsel %vm1049_vm12, %v1074_v32, %v1082_v10  ;;  %v1100_v0 = vsel %vm1049_vm12, %v1091_v48, %v1099_v1  ;;  %2660 = vsinq.f32 %v838_v25  ;;  %v901_v10 = vsel %vm898_vm6, %v899_v47, %v900_v49  ;;  %v2637_v1 = vld [vmem:[#allocation7 + $0x168] sm:$0xff]   ;;  %v2640_v32 = vld [vmem:[#allocation7 + $0x170] sm:$0xff]  }
 0x19d   : > { %1544 = vmatprep.mubr.bf16.mxu0 %v1083_v15  ;;  %1586 = vmatmul.mubr.bf16.vlgmr.msra.gmra.mrb[0].mxu1 %v1100_v0  ;;  %v921_v63 = vpack.c.bf16 %v901_v10, %v899_v47  ;;  %v748_v57 = vadd.f32 %v3444_v33, %v3291_v27  ;;  %v922_v3 = vpack.c.bf16 %v910_v61, %v908_v35  ;;  %v1119_v5 = vshrl.u32 %v920_v8, 16 }
 0x19e   : > { %1545 = vmatmul.mubr.bf16.vlgmr.msra.gmra.mrb[0].mxu0 %v1066_v17  ;;  %2384 = vmatpush3.bf16.msra.mxu1 %v2624_v19  ;;  %v2638_v17 = vld [vmem:[#allocation7 + $0x128] sm:$0xff]   ;;  %v1122_v19 = vshll.u32 %v920_v8, 16 }
 0x19f   : > { %2344 = vmatpush3.bf16.msra.mxu0 %v2623_v20  ;;  %2385 = vmatprep.subr.bf16.mxu1 %v2957_v36  ;;  %v1136_v11 = vshrl.u32 %v921_v63, 16  ;;  %v1139_v18 = vshll.u32 %v921_v63, 16  ;;  %v1153_v33 = vshrl.u32 %v922_v3, 16  ;;  %v2642_v20 = vld [vmem:[#allocation7 + $0x1b0] sm:$0xff]  }
 0x1a0   : > { %2345 = vmatprep.subr.bf16.mxu0 %v2625_v16  ;;  %2399 = vmatprep.mubr.msk.bf16.mxu1 %vm2958_vm5, %v2957_v36  ;;  %v1156_v16 = vshll.u32 %v922_v3, 16  ;;  %v2647_v3 = vld [vmem:[#allocation9 + $0x8] sm:$0xff]  }
 0x1a1   : > { %v1138_v25 = vrot.slane %v1136_v11, 2  ;;  %v1141_v14 = vrot.slane %v1139_v18, 3 }
 0x1a2   : > { %2386 = vmatpush3.bf16.msra.mxu1 %v2627_v26  ;;  %v1121_v26 = vrot.slane %v1119_v5, 2  ;;  %v1158_v35 = vrot.slane %v1156_v16, 3  ;;  %v2650_v5 = vld [vmem:[#allocation9 + $0x20] sm:$0xff]  }
 0x1a3   : > { %2346 = vmatpush3.bf16.msra.mxu0 %v2626_v28  ;;  %2387 = vmatprep.subr.bf16.mxu1 %v2957_v36  ;;  %v2643_v28 = vld [vmem:[#allocation7 + $0x178] sm:$0xff]  }
 0x1a4   : > { %2347 = vmatprep.subr.bf16.mxu0 %v2628_v37 }
 0x1a5   : > { %v2659_v52 = vpop.eup %2658 }
 0x1a6   : > { %2388 = vmatpush3.bf16.msra.mxu1 %v2630_v41  ;;  %v2661_v31 = vpop.eup %2660  ;;  %v849_v56 = vxor.u32 2147483648, %v2659_v52  ;;  %v1124_v41 = vrot.slane %v1122_v19, 3 }
 0x1a7   : > { %2348 = vmatpush3.bf16.msra.mxu0 %v2629_v39  ;;  %2389 = vmatprep.subr.bf16.mxu1 %v2957_v36  ;;  %v846_v58 = vxor.u32 2147483648, %v2661_v31 }
 0x1a8   : > { %2349 = vmatprep.subr.bf16.mxu0 %v2631_v45  ;;  %v850_v60 = vsel %vm848_vm8, %v849_v56, %v2661_v31  ;;  %v1125_v29 = vor.u32 %v1124_v41, %v1121_v26  ;;  %v2653_v41 = vld [vmem:[#allocation9 + $0x38] sm:$0xff]  }
 0x1a9   : > { %v847_v59 = vsel %vm845_vm10, %v2659_v52, %v846_v58  ;;  %v2644_v52 = vld [vmem:[#allocation7 + $0x138] sm:$0xff]  }
 0x1aa   : > { %2390 = vmatpush3.bf16.msra.mxu1 %v2633_v9  ;;  %v851_v30 = vsel %vm844_vm11, %v847_v59, %v850_v60  ;;  %v1155_v9 = vrot.slane %v1153_v33, 2 }
 0x1ab   : > { %2350 = vmatpush3.bf16.msra.mxu0 %v2632_v53  ;;  %2391 = vmatprep.subr.bf16.mxu1 %v2957_v36  ;;  %v852_v24 = vsel %vm842_vm13, nan, %v851_v30 }
 0x1ac   : > { %2351 = vmatprep.subr.bf16.mxu0 %v2634_v55  ;;  %v853_v12 = vmul.f32 %v852_v24, %v3291_v27  ;;  %v2641_v27 = vld [vmem:[#allocation7 + $0x130] sm:$0xff]   ;;  %v1142_v55 = vor.u32 %v1141_v14, %v1138_v25  ;;  %v1159_v60 = vor.u32 %v1158_v35, %v1155_v9  ;;  %v2646_v24 = vld [vmem:[#allocation9] sm:$0xff]   ;;  %v2651_v14 = vld [vmem:[#allocation9 + $0x28] sm:$0xff]  }
 0x1ae   : > { %2392 = vmatpush3.bf16.msra.mxu1 %v2636_v34  ;;  %v854_v48 = vsub.f32 %v748_v57, %v853_v12  ;;  %v2649_v12 = vld [vmem:[#allocation9 + $0x18] sm:$0xff]  }
 0x1af   : > { %2352 = vmatpush3.bf16.msra.mxu0 %v2635_v62  ;;  %2393 = vmatprep.subr.bf16.mxu1 %v2957_v36 }
 0x1b0   : > { %2353 = vmatprep.subr.bf16.mxu0 %v2637_v1  ;;  %855 = vst [vmem:[#allocation2 + $0x18] sm:$0xff] %v854_v48  ;;  %v902_v22 = vrot.slane %v854_v48, 5  ;;  %v893_v15 = vrot.slane %v854_v48, 4  ;;  %v911_v0 = vrot.slane %v854_v48, 6 }
 0x1b2   : > { %2394 = vmatpush3.bf16.msra.mxu1 %v2639_v4  ;;  %v903_v37 = vsel %vm898_vm6, %v900_v49, %v902_v22  ;;  %v894_v21 = vsel %vm889_vm7, %v891_v51, %v893_v15  ;;  %v912_v39 = vsel %vm907_vm9, %v909_v50, %v911_v0  ;;  %v2648_v4 = vld [vmem:[#allocation9 + $0x10] sm:$0xff]  }
 0x1b3   : > { %2354 = vmatpush3.bf16.msra.mxu0 %v2638_v17  ;;  %2395 = vmatprep.subr.bf16.mxu1 %v2957_v36  ;;  %v928_v23 = vpack.c.bf16 %v903_v37, %v903_v37  ;;  %v927_v45 = vpack.c.bf16 %v894_v21, %v894_v21  ;;  %v929_v47 = vpack.c.bf16 %v912_v39, %v912_v39  ;;  %v2652_v21 = vld [vmem:[#allocation9 + $0x30] sm:$0xff]   ;;  %v1676_v39 = vld [vmem:[%s3833_s26] sm:$0x1] }
 0x1b4   : > { %2355 = vmatprep.subr.bf16.mxu0 %v2640_v32  ;;  %v2213_v32 = vld [vmem:[%s3832_s23] ss:$0 sm:$0xff]  ;;  %v1680_v35 = vmul.f32 2.0, %v1676_v39 }
 0x1b5   : > { %v1144_v49 = vshrl.u32 %v928_v23, 16  ;;  %v1147_v53 = vshll.u32 %v928_v23, 16  ;;  %v1127_v31 = vshrl.u32 %v927_v45, 16  ;;  %v1130_v51 = vshll.u32 %v927_v45, 16 }
 0x1b6   : > { %2396 = vmatpush3.bf16.msra.mxu1 %v2642_v20  ;;  %v1161_v56 = vshrl.u32 %v929_v47, 16  ;;  %v1164_v50 = vshll.u32 %v929_v47, 16  ;;  %v1677_v23 = vadd.f32 1e-09, %v1676_v39 }
 0x1b7   : > { %2356 = vmatpush3.bf16.msra.mxu0 %v2641_v27  ;;  %2397 = vmatprep.subr.bf16.mxu1 %v2957_v36  ;;  %v1146_v10 = vrot.slane %v1144_v49, 2  ;;  %v1149_v13 = vrot.slane %v1147_v53, 3  ;;  %v1129_v58 = vrot.slane %v1127_v31, 2  ;;  %v1132_v34 = vrot.slane %v1130_v51, 3 }
 0x1b8   : > { %2357 = vmatprep.subr.bf16.mxu0 %v2643_v28  ;;  %v1163_v61 = vrot.slane %v1161_v56, 2  ;;  %v1166_v62 = vrot.slane %v1164_v50, 3  ;;  %2662 = vrcp.f32 %v1677_v23  ;;  %v1693_v50 = vrot.slane %v1680_v35, %v3224_v2 }
 0x1b9   : > { %v1150_v59 = vor.u32 %v1149_v13, %v1146_v10  ;;  %v1133_v63 = vor.u32 %v1132_v34, %v1129_v58 }
 0x1ba   : > { %2398 = vmatpush3.bf16.msra.mxu1 %v2645_v43  ;;  %v1167_v8 = vor.u32 %v1166_v62, %v1163_v61 }
 0x1bb   : > { %2358 = vmatpush3.bf16.msra.mxu0 %v2644_v52  ;;  %v1151_v1 = vsel %vm1049_vm12, %v1142_v55, %v1150_v59  ;;  %v1134_v57 = vsel %vm1049_vm12, %v1125_v29, %v1133_v63 }
 0x1bc   : > { %2403 = vmatprep.subr.bf16.mxu0 %v2957_v36  ;;  %1626 = vmatprep.mubr.bf16.mxu0 %v1151_v1  ;;  %v1168_v30 = vsel %vm1049_vm12, %v1159_v60, %v1167_v8 }
 0x1bd   : > { %2400 = vmatmul.mubr.bf16.vlgmr.msra.gmra.mrb[4].mxu1 %v1168_v30 }
 0x1be   : > { %1627 = vmatmul.mubr.bf16.vlgmr.msra.gmra.mrb[4].mxu0 %v1134_v57 }
 0x1bf   : > { %2419 = vmatprep.mubr.msk.bf16.mxu0 %vm2958_vm5, %v2957_v36  ;;  %2404 = vmatpush3.bf16.msra.mxu0 %v2646_v24 }
 0x1c0   : > { %2405 = vmatprep.subr.bf16.mxu0 %v2957_v36 }
 0x1c2   : > { %v2663_v45 = vpop.eup %2662 }
 0x1c3   : > { %2406 = vmatpush3.bf16.msra.mxu0 %v2647_v3  ;;  %v1679_v9 = vmul.f32 0.5, %v2663_v45 }
 0x1c4   : > { %2407 = vmatprep.subr.bf16.mxu0 %v2957_v36 }
 0x1c5   : > { %v3589_v56 = vrot.slane %v1679_v9, %v3224_v2 }
 0x1c7   : > { %2408 = vmatpush3.bf16.msra.mxu0 %v2648_v4 }
 0x1c8   : > { %2409 = vmatprep.subr.bf16.mxu0 %v2957_v36 }
 0x1cb   : > { %2410 = vmatpush3.bf16.msra.mxu0 %v2649_v12 }
 0x1cc   : > { %2411 = vmatprep.subr.bf16.mxu0 %v2957_v36 }
 0x1cf   : > { %2412 = vmatpush3.bf16.msra.mxu0 %v2650_v5 }
 0x1d0   : > { %2413 = vmatprep.subr.bf16.mxu0 %v2957_v36 }
 0x1d3   : > { %2414 = vmatpush3.bf16.msra.mxu0 %v2651_v14 }
 0x1d4   : > { %2415 = vmatprep.subr.bf16.mxu0 %v2957_v36 }
 0x1d7   : > { %2416 = vmatpush3.bf16.msra.mxu0 %v2652_v21 }
 0x1d8   : > { %2417 = vmatprep.subr.bf16.mxu0 %v2957_v36 }
 0x1db   : > { %2418 = vmatpush3.bf16.msra.mxu0 %v2653_v41 }
 0x270   : > { %v2337_v17 = vpop.f32.mrb[0].mxu1 }
 0x271   : > { %v2315_v11 = vpop.f32.mrb[0].mxu0  ;;  %v2338_v18 = vpop.f32.mrb[1].mxu1 }
 0x272   : > { %v2316_v48 = vpop.f32.mrb[1].mxu0  ;;  %v2339_v19 = vadd.f32 %v2338_v18, %v2337_v17  ;;  %v2340_v33 = vpop.f32.mrb[2].mxu1 }
 0x273   : > { %v2317_v20 = vadd.f32 %v2316_v48, %v2315_v11  ;;  %v2318_v22 = vpop.f32.mrb[2].mxu0  ;;  %v2341_v15 = vpop.f32.mrb[3].mxu1 }
 0x274   : > { %v2319_v0 = vpop.f32.mrb[3].mxu0  ;;  %v2342_v16 = vadd.f32 %v2341_v15, %v2340_v33 }
 0x275   : > { %v1547_v27 = vadd.f32 %v2317_v20, %v2213_v32  ;;  %v2320_v25 = vadd.f32 %v2319_v0, %v2318_v22 }
 0x277   : > { %v1550_v26 = vadd.f32 %v2320_v25, %v2213_v32  ;;  %v1588_v28 = vadd.f32 %v2339_v19, %v1547_v27 }
 0x279   : > { %v1591_v37 = vadd.f32 %v2342_v16, %v1550_v26 }
 0x290   : > { %v1669_v43 = vpop.f32.mrb[4].mxu1 }
 0x291   : > { %v2359_v47 = vpop.f32.mrb[4].mxu0  ;;  %v2401_v49 = vpop.f32.mrb[5].mxu1 }
 0x292   : > { %v2360_v52 = vpop.f32.mrb[5].mxu0  ;;  %v1672_v51 = vpop.f32.mrb[6].mxu1 }
 0x293   : > { %v2361_v53 = vadd.f32 %v2360_v52, %v2359_v47  ;;  %v2362_v31 = vpop.f32.mrb[6].mxu0  ;;  %v2402_v36 = vpop.f32.mrb[7].mxu1 }
 0x294   : > { %v2363_v55 = vpop.f32.mrb[7].mxu0 }
 0x295   : > { %v1629_v29 = vadd.f32 %v2361_v53, %v1588_v28  ;;  %v2364_v10 = vadd.f32 %v2363_v55, %v2362_v31 }
 0x297   : > { %v1670_v13 = vadd.f32 %v1669_v43, %v1629_v29  ;;  %v1632_v58 = vadd.f32 %v2364_v10, %v1591_v37 }
 0x299   : > { %v3593_v34 = vadd.f32 %v3589_v56, %v1670_v13  ;;  %v3595_v60 = vmul.f32 %v1693_v50, %v1670_v13  ;;  %v1673_v61 = vadd.f32 %v1672_v51, %v1632_v58 }
 0x29b   : > { %v1697_v62 = vand.u32 2147483647, %v3595_v60  ;;  %v1700_v59 = vand.u32 2139095040, %v3595_v60  ;;  %v3600_v63 = vadd.f32 %v3589_v56, %v1673_v61  ;;  %v3602_v8 = vmul.f32 %v1693_v50, %v1673_v61 }
 0x29c   : > { %vm1699_vm11 = vcmp.lt.s32.totalorder %v3595_v60, 0 }
 0x29d   : > { %v1701_v1 = vshrl.u32 %v1700_v59, 23  ;;  %v1704_v2 = vand.u32 8388607, %v1697_v62  ;;  %v1803_v57 = vand.u32 2139095040, %v3602_v8  ;;  %v1800_v24 = vand.u32 2147483647, %v3602_v8 }
 0x29e   : > { %vm1698_vm13 = vcmp.le.f32.partialorder %v1697_v62, 0.7853982 }
 0x29f   : > { %v2270_v30 = vadd.s32 4294967169, %v1701_v1  ;;  %v1804_v3 = vshrl.u32 %v1803_v57, 23  ;;  %v1705_v12 = vor.u32 8388608, %v1704_v2  ;;  %v1807_v11 = vand.u32 8388607, %v1800_v24 }
 0x2a1   : > { %v1707_v4 = vadd.s32 1, %v2270_v30  ;;  %v2274_v17 = vadd.s32 4294967169, %v1804_v3  ;;  %v3610_v19 = vshll.u32 %v1705_v12, 8  ;;  %v1808_v22 = vor.u32 8388608, %v1807_v11 }
 0x2a3   : > { %vm1708_vm12 = vcmp.gt.s32.totalorder %v1707_v4, 0  ;;  %v1810_v5 = vadd.s32 1, %v2274_v17  ;;  %v1848_v10 = vshll.u32 %v1808_v22, 8 }
 0x2a4   : > { %v1709_v18 = vsel %vm1708_vm12, %v1707_v4, 0  ;;  %vm1802_vm12 = vcmp.lt.s32.totalorder %v3602_v8, 0 }
 0x2a5   : > { %v1710_v32 = vshrl.u32 %v1709_v18, 5  ;;  %v1711_v48 = vand.u32 31, %v1709_v18  ;;  %vm1811_vm14 = vcmp.gt.s32.totalorder %v1810_v5, 0 }
 0x2a6   : > { %v1812_v45 = vsel %vm1811_vm14, %v1810_v5, 0  ;;  %vm3677_vm14 = vcmp.le.f32.partialorder %v1800_v24, 0.7853982 }
 0x2a7   : > { %v1712_v33 = vsub.s32 32, %v1711_v48  ;;  %v1714_v20 = vshll.u32 %v2951_v38, %v1711_v48  ;;  %v1717_v15 = vshll.u32 %v2952_v40, %v1711_v48  ;;  %v1720_v0 = vshll.u32 %v2953_v42, %v1711_v48 }
 0x2a8   : > { %v1723_v16 = vshll.u32 %v2954_v44, %v1711_v48  ;;  %v1726_v27 = vshll.u32 %v2955_v46, %v1711_v48  ;;  %vm1729_vm15 = vcmp.lt.s32.totalorder %v1710_v32, 1  ;;  %vm1731_vm0 = vcmp.lt.s32.totalorder %v1710_v32, 3 }
 0x2a9   : > { %v1715_v25 = vshrl.u32 %v2952_v40, %v1712_v33  ;;  %v1718_v14 = vshrl.u32 %v2953_v42, %v1712_v33  ;;  %v1721_v26 = vshrl.u32 %v2954_v44, %v1712_v33  ;;  %v1713_v28 = vshrl.u32 %v2951_v38, %v1712_v33 }
 0x2aa   : > { %v1724_v37 = vshrl.u32 %v2955_v46, %v1712_v33  ;;  %v1727_v21 = vshrl.u32 %v2956_v54, %v1712_v33  ;;  %vm1732_vm1 = vcmp.lt.s32.totalorder %v1710_v32, 4  ;;  %v1814_v9 = vand.u32 31, %v1812_v45 }
 0x2ab   : > { %v1716_v41 = vor.u32 %v1715_v25, %v1714_v20  ;;  %v1719_v39 = vor.u32 %v1718_v14, %v1717_v15  ;;  %v1722_v23 = vor.u32 %v1721_v26, %v1720_v0  ;;  %vm1730_vm2 = vcmp.lt.s32.totalorder %v1710_v32, 2 }
 0x2ac   : > { %v1725_v47 = vor.u32 %v1724_v37, %v1723_v16  ;;  %v1728_v43 = vor.u32 %v1727_v21, %v1726_v27  ;;  %v1815_v36 = vsub.s32 32, %v1814_v9  ;;  %v1813_v59 = vshrl.u32 %v1812_v45, 5 }
 0x2ad   : > { %v1733_v35 = vsel %vm1729_vm15, %v1713_v28, %v1716_v41  ;;  %v1734_v52 = vsel %vm1732_vm1, %v1722_v23, 2102212464  ;;  %v1737_v49 = vsel %vm1729_vm15, %v1716_v41, %v1719_v39  ;;  %v1741_v53 = vsel %vm1729_vm15, %v1719_v39, %v1722_v23 }
 0x2ae   : > { %v1735_v31 = vsel %vm1731_vm0, %v1719_v39, %v1734_v52  ;;  %v1738_v51 = vsel %vm1732_vm1, %v1725_v47, 920167782  ;;  %v1742_v55 = vsel %vm1732_vm1, %v1728_v43, 1326507024  ;;  %v1817_v3 = vshll.u32 %v2951_v38, %v1814_v9 }
 0x2af   : > { %v1739_v29 = vsel %vm1731_vm0, %v1722_v23, %v1738_v51  ;;  %v1743_v50 = vsel %vm1731_vm0, %v1725_v47, %v1742_v55  ;;  %v1736_v13 = vsel %vm1730_vm2, %v1733_v35, %v1735_v31  ;;  %v1818_v4 = vshrl.u32 %v2952_v40, %v1815_v36 }
 0x2b0   : > { %v1740_v58 = vsel %vm1730_vm2, %v1737_v49, %v1739_v29  ;;  %v1744_v61 = vsel %vm1730_vm2, %v1741_v53, %v1743_v50  ;;  %v1820_v12 = vshll.u32 %v2952_v40, %v1814_v9  ;;  %v1821_v17 = vshrl.u32 %v2953_v42, %v1815_v36 }
 0x2b1   : > { %v3631_v1 = vmul.u32.u64.low %v3610_v19, %v1744_v61  ;;  %v3632_v2 = vmul.u32.u64.high %v3610_v19, %v1744_v61, %v3631_v1  ;;  %v3635_v57 = vmul.u32.u64.low %v3610_v19, %v1740_v58  ;;  %v3636_v30 = vmul.u32.u64.high %v3610_v19, %v1740_v58, %v3635_v57 }
 0x2b2   : > { %v1823_v11 = vshll.u32 %v2953_v42, %v1814_v9  ;;  %v1824_v18 = vshrl.u32 %v2954_v44, %v1815_v36  ;;  %v1826_v5 = vshll.u32 %v2954_v44, %v1814_v9  ;;  %v1827_v32 = vshrl.u32 %v2955_v46, %v1815_v36 }
 0x2b3   : > { %v1819_v48 = vor.u32 %v1818_v4, %v1817_v3  ;;  %v1822_v33 = vor.u32 %v1821_v17, %v1820_v12  ;;  %v1829_v20 = vshll.u32 %v2955_v46, %v1814_v9  ;;  %v1830_v22 = vshrl.u32 %v2956_v54, %v1815_v36 }
 0x2b4   : > { %v1752_v15 = vmul.u32 %v3610_v19, %v1736_v13  ;;  %vm1754_vm3 = vc.u32 %v3632_v2, %v3635_v57  ;;  %v1755_v40 = vadd.s32 1, %v3636_v30  ;;  %v1825_v42 = vor.u32 %v1824_v18, %v1823_v11 }
 0x2b5   : > { %v1816_v0 = vshrl.u32 %v2951_v38, %v1815_v36  ;;  %v1828_v16 = vor.u32 %v1827_v32, %v1826_v5  ;;  %v1831_v44 = vor.u32 %v1830_v22, %v1829_v20  ;;  %vm1832_vm4 = vcmp.lt.s32.totalorder %v1813_v59, 1 }
 0x2b6   : > { %v1756_v27 = vsel %vm1754_vm3, %v1755_v40, %v3636_v30  ;;  %vm1834_vm5 = vcmp.lt.s32.totalorder %v1813_v59, 3  ;;  %vm1835_vm6 = vcmp.lt.s32.totalorder %v1813_v59, 4  ;;  %v1840_v46 = vsel %vm1832_vm4, %v1819_v48, %v1822_v33 }
 0x2b7   : > { %v1757_v25 = vadd.s32 %v1756_v27, %v1752_v15  ;;  %v1837_v54 = vsel %vm1835_vm6, %v1825_v42, 2102212464  ;;  %v1841_v14 = vsel %vm1835_vm6, %v1828_v16, 920167782  ;;  %v1844_v19 = vsel %vm1832_vm4, %v1822_v33, %v1825_v42 }
 0x2b8   : > { %vm1833_vm7 = vcmp.lt.s32.totalorder %v1813_v59, 2  ;;  %v1836_v26 = vsel %vm1832_vm4, %v1816_v0, %v1819_v48  ;;  %v1842_v28 = vsel %vm1834_vm5, %v1825_v42, %v1841_v14  ;;  %v1845_v37 = vsel %vm1835_vm6, %v1831_v44, 1326507024 }
 0x2b9   : > { %v1758_v21 = vadd.s32 536870912, %v1757_v25  ;;  %v1838_v41 = vsel %vm1834_vm5, %v1822_v33, %v1837_v54  ;;  %v1843_v39 = vsel %vm1833_vm7, %v1840_v46, %v1842_v28  ;;  %v1846_v38 = vsel %vm1834_vm5, %v1828_v16, %v1845_v37 }
 0x2ba   : > { %v1847_v23 = vsel %vm1833_vm7, %v1844_v19, %v1846_v38  ;;  %v3655_v45 = vmul.u32.u64.low %v1848_v10, %v1843_v39  ;;  %v3656_v47 = vmul.u32.u64.high %v1848_v10, %v1843_v39, %v3655_v45  ;;  %v1839_v52 = vsel %vm1833_vm7, %v1836_v26, %v1838_v41 }
 0x2bb   : > { %v1759_v43 = vshrl.u32 %v1758_v21, 30  ;;  %v3658_v9 = vmul.u32.u64.low %v1848_v10, %v1847_v23  ;;  %v3659_v35 = vmul.u32.u64.high %v1848_v10, %v1847_v23, %v3658_v9  ;;  %v1855_v51 = vmul.u32 %v1848_v10, %v1839_v52 }
 0x2bc   : > { %v1858_v53 = vadd.s32 1, %v3656_v47  ;;  %v1753_v10 = vadd.s32 %v3635_v57, %v3632_v2  ;;  %vm1789_vm2 = vweird.f32 %v3595_v60  ;;  %vm1892_vm6 = vweird.f32 %v3602_v8 }
 0x2bd   : > { %v1760_v49 = vshll.u32 %v1759_v43, 30  ;;  %vm1857_vm8 = vc.u32 %v3659_v35, %v3655_v45  ;;  %v1856_v44 = vadd.s32 %v3655_v45, %v3659_v35  ;;  %v1783_v19 = vsub.s32 4, %v1759_v43 }
 0x2be   : > { %v1859_v55 = vsel %vm1857_vm8, %v1858_v53, %v3656_v47 }
 0x2bf   : > { %v1761_v31 = vsub.s32 %v1757_v25, %v1760_v49  ;;  %v1860_v29 = vadd.s32 %v1859_v55, %v1855_v51  ;;  %v1784_v41 = vsel %vm1699_vm11, %v1783_v19, %v1759_v43 }
 0x2c0   : > { %v1786_v23 = vsel %vm1698_vm13, 0, %v1784_v41 }
 0x2c1   : > { %v1763_v36 = vsub.s32 0, %v1761_v31  ;;  %v1861_v13 = vadd.s32 536870912, %v1860_v29  ;;  %v1790_v9 = vand.u32 3, %v1786_v23 }
 0x2c3   : > { %v2271_v50 = vmin.u32 %v1763_v36, %v1761_v31  ;;  %v3664_v61 = vshrl.u32 %v1861_v13, 30  ;;  %vm1795_vm15 = vcmp.eq.s32.totalorder %v1790_v9, 2  ;;  %vm1792_vm0 = vcmp.eq.s32.totalorder %v1790_v9, 0 }
 0x2c4   : > { %vm1791_vm1 = vcmp.lt.s32.totalorder %v1790_v9, 2 }
 0x2c5   : > { %v1765_v58 = vclz %v2271_v50  ;;  %v1863_v1 = vshll.u32 %v3664_v61, 30  ;;  %v1886_v52 = vsub.s32 4, %v3664_v61 }
 0x2c7   : > { %v2272_v59 = vadd.s32 4294967294, %v1765_v58  ;;  %v1864_v3 = vsub.s32 %v1860_v29, %v1863_v1  ;;  %v1887_v24 = vsel %vm1802_vm12, %v1886_v52, %v3664_v61 }
 0x2c8   : > { %v1889_v13 = vsel %vm3677_vm14, 0, %v1887_v24 }
 0x2c9   : > { %vm2273_vm9 = vcmp.lt.s32.totalorder %v2272_v59, 0  ;;  %v1866_v17 = vsub.s32 0, %v1864_v3  ;;  %v1893_v1 = vand.u32 3, %v1889_v13 }
 0x2ca   : > { %v1768_v30 = vsel %vm2273_vm9, 0, %v2272_v59 }
 0x2cb   : > { %v1769_v4 = vsub.s32 32, %v1768_v30  ;;  %v1773_v12 = vsub.s32 4294967266, %v1768_v30  ;;  %v1770_v11 = vshll.u32 %v1761_v31, %v1768_v30  ;;  %v2275_v32 = vmin.u32 %v1866_v17, %v1864_v3 }
 0x2cc   : > { %vm1898_vm3 = vcmp.eq.s32.totalorder %v1893_v1, 2  ;;  %vm1895_vm4 = vcmp.eq.s32.totalorder %v1893_v1, 0  ;;  %vm1894_vm5 = vcmp.lt.s32.totalorder %v1893_v1, 2 }
 0x2cd   : > { %v1771_v18 = vshrl.u32 %v1753_v10, %v1769_v4  ;;  %v1774_v5 = vadd.s32 127, %v1773_v12  ;;  %v1868_v20 = vclz %v2275_v32 }
 0x2cf   : > { %v1772_v48 = vor.u32 %v1771_v18, %v1770_v11  ;;  %v1775_v33 = vshll.u32 %v1774_v5, 23  ;;  %v2276_v15 = vadd.s32 4294967294, %v1868_v20  ;;  %v2278_v5 = vld [vmem:[%s3836_s7] ss:$0 sm:$0xff] }
 0x2d1   : > { %v1776_v22 = vor.u32 4788187, %v1775_v33  ;;  %v1779_v42 = vcvt.s32.f32 %v1772_v48  ;;  %vm2277_vm10 = vcmp.lt.s32.totalorder %v2276_v15, 0 }
 0x2d2   : > { %v1871_v16 = vsel %vm2277_vm10, 0, %v2276_v15 }
 0x2d3   : > { %v1777_v40 = vand.u32 2147483647, %v1776_v22  ;;  %v1872_v2 = vsub.s32 32, %v1871_v16  ;;  %v1876_v57 = vsub.s32 4294967266, %v1871_v16  ;;  %v1873_v46 = vshll.u32 %v1864_v3, %v1871_v16 }
 0x2d5   : > { %v1780_v0 = vmul.f32 %v1779_v42, %v1777_v40  ;;  %v1874_v25 = vshrl.u32 %v1856_v44, %v1872_v2  ;;  %v1877_v54 = vadd.s32 127, %v1876_v57 }
 0x2d7   : > { %v1781_v27 = vxor.u32 2147483648, %v1780_v0  ;;  %v1875_v28 = vor.u32 %v1874_v25, %v1873_v46  ;;  %v1878_v37 = vshll.u32 %v1877_v54, 23 }
 0x2d9   : > { %v1782_v14 = vsel %vm1699_vm11, %v1781_v27, %v1780_v0  ;;  %v1879_v21 = vor.u32 4788187, %v1878_v37  ;;  %v1882_v38 = vcvt.s32.f32 %v1875_v28 }
 0x2da   : > { %v1785_v26 = vsel %vm1698_vm13, %v3595_v60, %v1782_v14 }
 0x2db   : > { %2664 = vcosq.f32 %v1785_v26  ;;  %v1880_v39 = vand.u32 2147483647, %v1879_v21 }
 0x2dc   : > { %2666 = vsinq.f32 %v1785_v26 }
 0x2dd   : > { %v1883_v45 = vmul.f32 %v1882_v38, %v1880_v39 }
 0x2df   : > { %v1884_v47 = vxor.u32 2147483648, %v1883_v45 }
 0x2e1   : > { %v1885_v35 = vsel %vm1802_vm12, %v1884_v47, %v1883_v45 }
 0x2e2   : > { %v1888_v43 = vsel %vm3677_vm14, %v3602_v8, %v1885_v35 }
 0x2e3   : > { %2668 = vcosq.f32 %v1888_v43 }
 0x2e4   : > { %2670 = vsinq.f32 %v1888_v43 }
 0x2e5   : > { %v2665_v49 = vpop.eup %2664 }
 0x2e6   : > { %v2667_v53 = vpop.eup %2666  ;;  %v1796_v31 = vxor.u32 2147483648, %v2665_v49 }
 0x2e7   : > { %v1793_v51 = vxor.u32 2147483648, %v2667_v53 }
 0x2e8   : > { %v1797_v55 = vsel %vm1795_vm15, %v1796_v31, %v2667_v53 }
 0x2e9   : > { %v1794_v36 = vsel %vm1792_vm0, %v2665_v49, %v1793_v51 }
 0x2ea   : > { %v1798_v29 = vsel %vm1791_vm1, %v1794_v36, %v1797_v55 }
 0x2eb   : > { %v1799_v50 = vsel %vm1789_vm2, nan, %v1798_v29 }
 0x2ec   : > { %v1903_v58 = vmul.f32 %v1799_v50, %v3589_v56 }
 0x2ed   : > { %v2669_v30 = vpop.eup %2668 }
 0x2ee   : > { %v1905_v59 = vsub.f32 %v3593_v34, %v1903_v58  ;;  %v2671_v3 = vpop.eup %2670  ;;  %v1899_v10 = vxor.u32 2147483648, %v2669_v30 }
 0x2ef   : > { %v1896_v61 = vxor.u32 2147483648, %v2671_v3 }
 0x2f0   : > { %v1900_v4 = vsel %vm1898_vm3, %v1899_v10, %v2671_v3 }
 0x2f1   : > { %v1897_v60 = vsel %vm1895_vm4, %v2669_v30, %v1896_v61 }
 0x2f2   : > { %v1901_v12 = vsel %vm1894_vm5, %v1897_v60, %v1900_v4 }
 0x2f3   : > { %v1902_v17 = vsel %vm1892_vm6, nan, %v1901_v12 }
 0x2f4   : > { %v1904_v11 = vmul.f32 %v1902_v17, %v3589_v56 }
 0x2f6   : > { %v1906_v34 = vsub.f32 %v3600_v63, %v1904_v11 }
 0x2f8   : > { %v1907_v18 = vpack.c.bf16 %v1906_v34, %v1905_v59 }
 0x2fa   : > { %2420 = vmatmul.mubr.bf16.vlgmr.msra.gmra.mrb[8].mxu0 %v1907_v18 }
 0x3cd   : > { %v2013_v32 = vpop.f32.mrb[8].mxu0 }
 0x3ce   : > { %v2014_v8 = vadd.f32 %v2278_v5, %v2013_v32  ;;  %v2421_v48 = vpop.f32.mrb[9].mxu0 }
 0x3cf   : > { %v2016_v56 = vpop.f32.mrb[10].mxu0 }
 0x3d0   : > { %v2020_v63 = vadd.f32 %v2014_v8, %v3255_v6  ;;  %v2017_v33 = vadd.f32 %v2278_v5, %v2016_v56  ;;  %v2422_v20 = vpop.f32.mrb[11].mxu0 }
 0x3d2   : > { %2022 = vst [vmem:[%s3402_s21] sm:$0xff] %v2020_v63  ;;  %v2021_v22 = vadd.f32 %v2017_v33, %v3259_v7 }
 0x3d4   : > { %2023 = vst [vmem:[%s3402_s21 + $0x8] sm:$0xff] %v2021_v22 }
 0x3d5   : > { %2820 = shalt.err (!%p2817_p12)
}
 0x3d6   : > { %s2821_s21 = scalar_lea.hbm %s3708_s18, 256  ;;  %s2825_s19 = scalar_lea.hbm %s3837_s20, 2048 }
 0x3d7   : > { %p2822_p5 = scmp.ne.s32.totalorder %s3708_s18, %s2821_s21  ;;  %p2826_p0 = scmp.lt.u32.totalorder %s3708_s18, %s3837_s20 }
 0x3d8   : > { %p2827_p1 = scmp.lt.u32.totalorder %s2825_s19, %s2821_s21  ;;  %p2829_p8 = scmp.lt.u32.totalorder %s2821_s21, %s3708_s18 }
 0x3d9   : > { %p2823_p10 = pnand %p2822_p5, %p3839_p4 }
 0x3da   : > { %p2828_p2 = por %p2827_p1, %p2826_p0 }
 0x3db   : > { %p2824_p13 = pneg %p2823_p10 }
 0x3dc   : > { %p2830_p3 = por %p2829_p8, %p2828_p2 }
 0x3de   : > { %p2831_p9 = pnand %p2830_p3, %p2824_p13 }
 0x3e0   : > { %2834 = shalt.err (!%p2831_p9)
}
 0x3e1   : > { %s2960_s24 = smov 128   ;;  %s2961_s8 = smov 8  }
 0x3e2   : > { %2456 = dma.vmem_to_hbm [thread:$0]  (%p3839_p4), %s3701_s13, 256, %s3708_s18, %s3713_s3, %s2960_s24, %s2960_s24, %s2961_s8  }
 0x3e3 PF: > { %s3840_s5 = sld [smem:[#allocation22_spill]]  ;;  %s3841_s7 = sld [smem:[#allocation29_spill]] }
 0x3e4   : > { %p2473_p11 = scmp.ge.s32.totalorder %s2940_s15, 2 }
 0x3e9   : > { %s2055_s6 = sand.u32 1, %s3840_s5   ;;  %p3842_p6 = scmp.ne.s32.totalorder %s3841_s7, 0 }
 0x3ea   : > { %s2056_s22 = scalar_lea.sflag [#allocation6], %s2055_s6 }
 0x3eb   : > { %p2466_p7 = pnand %p2473_p11, %p3842_p6 }
 0x3ed   : > { %2892 = dma.done.wait (!%p2466_p7), %s2056_s22, 256  }
 0x3ee   : > { %2894 = vsyncadd (!%p2466_p7), %s2056_s22, 4294967040  ;;  %s25_s15 = sadd.s32 1, %s2940_s15   ;;  %s3843_s11 = sld [smem:[#allocation23_spill]] }
 0x3ef   : > { %p22_p12 = scmp.ge.s32.totalorder %s25_s15, 10   ;;  %s3844_s29 = sld [smem:[#allocation28_spill]] }
 0x3f0   : > { %s3845_s4 = sld [smem:[#allocation27_spill]]  ;;  %s3846_s13 = sld [smem:[#allocation24_spill]] }
 0x3f1   : > { %s3847_s18 = sld [smem:[#allocation25_spill]]  ;;  %s3848_s3 = sld [smem:[#allocation26_spill]] }
 0x3f2   : > { %s3849_s27 = smov %s2904_s28  ;;  %s3851_s30 = smov %s2916_s9 }
 0x3f3   : > { %s3852_s9 = smov %s2920_s10  ;;  %s3855_s12 = smov %s2936_s14 }
 0x3f4   : > { %s3850_s28 = smov %s3843_s11  ;;  %24 = sbr.rel (!%p22_p12) target bundleno = 18 (0x12), region = 114 }
 0x3f6   : > { %s3853_s10 = smov %s3845_s4  ;;  %s3854_s11 = smov %s3846_s13 }
 0x3f7   : > { %s3856_s13 = smov %s3847_s18  ;;  %s3857_s14 = smov %s3848_s3 }
 0x3fb   :  { %2061 = vsyncpa [#allocation5], 1 }
 0x3fc   :  { %2063 = vsyncpa [#allocation5 + $0x1], 1 }
 0x3fd   :  { %2064 = vsyncpa [#allocation8], 1 }
 0x3fe   :  { %2065 = vsyncpa [#allocation6], 1 }
 0x3ff   :  { %2067 = vsyncpa [#allocation6 + $0x1], 1 }
 0x400   :  { %2068 = vsyncmov [#allocation3] }
 0x403   :  { %s2069_s17 = vpop.sfrf %2068 }
 0x404   :  { %p2293_p4 = scmp.ne.s32.totalorder %s2069_s17, 0 }
 0x406   :  { %2073 = shalt.err (%p2293_p4)  }
 0x407   :  { %2075 = vsyncmov [#allocation3 + $0x1] }
 0x40a   :  { %s2076_s2 = vpop.sfrf %2075 }
 0x40b   :  { %p2294_p5 = scmp.ne.s32.totalorder %s2076_s2, 0 }
 0x40d   :  { %2080 = shalt.err (%p2294_p5)  }

</bundles_post_ra>
